<compile_context>
chip_gen: v7x
topology: tpu7x:2x2x1
jax: 0.10.0
libtpu: 0.0.40
codegen_flags: <defaults>
</compile_context>

<pallas_src>
import functools

import jax
import jax.numpy as jnp
import numpy as np
from jax import lax
from jax.experimental import pallas as pl
from jax.experimental.pallas import tpu as pltpu

KS = 15             # erosion structuring element size (ones(15, 15) in __init__)
R = 60              # guided_filter_plus box-blur window (r=60)
EPS = 1e-4          # guided_filter_plus eps
GEODESIC_PAD = 1e4  # kornia.morphology.erosion geodesic border value (max_val)


# ----------------------- static banded reflect operators ---------------------

def _reflect_index(idx, n):
    # numpy 'reflect' (no edge repeat), same as torch F.pad(mode='reflect')
    if n == 1:
        return np.zeros_like(idx)
    period = 2 * (n - 1)
    idx = np.mod(idx, period)
    return np.where(idx >= n, period - idx, idx)


def _box_reflect_counts(n, r):
    """(n, n) integer-count matrix C with C[i, j] = #times source index j appears
    in the reflect-padded r-wide box window of output i (kornia box_blur with
    asymmetric pad_front=(r-1)//2, pad_rear=r-1-pad_front).  Counts are small
    integers -> exactly representable in bf16; the 1/r normalization is applied
    in f32 on the matmul result instead of being folded into the weights."""
    pf = (r - 1) // 2
    offs = np.arange(-pf, r - pf)                                    # length r
    src = _reflect_index(np.arange(n)[:, None] + offs[None, :], n)   # (n, r)
    m = np.zeros((n, n), dtype=np.float32)
    np.add.at(m, (np.repeat(np.arange(n), r), src.ravel()), 1.0)
    return m


# ------------------------------ kernel helpers --------------------------------

def _shifted_fill(x, d, axis, fill):
    """y[i] = x[i + d] along `axis`; positions falling outside the array read
    `fill`.  The wrap mask is derived by rolling an iota with the SAME roll call,
    so the construction is independent of the roll sign convention (callers
    always combine +d and -d symmetrically)."""
    n = x.shape[axis]
    shift = (-d) % n
    idx = lax.broadcasted_iota(jnp.int32, x.shape, axis)
    rolled = pltpu.roll(x, shift, axis)
    ridx = pltpu.roll(idx, shift, axis)
    valid = jnp.abs(ridx - idx) == abs(d)          # wrapped lanes -> invalid
    return jnp.where(valid, rolled, fill)


def _erode_const_border(x, ks, fill):
    """ks x ks erosion (sliding min) of a 2-D map with a constant `fill` border
    (kornia 'geodesic' border), separable, symmetric log-doubling: 3 roll/min
    levels per axis for ks=15 instead of 14 shifts, all on full (8,128) tiles."""
    assert ks % 2 == 1
    half = ks // 2
    for axis in (1, 0):
        r = 0
        while r < half:
            s = min(r + 1, half - r)   # s <= r+1 keeps border coverage exact
            x = jnp.minimum(x, jnp.minimum(_shifted_fill(x, s, axis, fill),
                                           _shifted_fill(x, -s, axis, fill)))
            r += s
    return x


# ------------------------------ Pallas kernel ---------------------------------

def _dcp_kernel(i_ref, ah_ref, awt_ref, q_ref, *, ks, r, eps, h, w):
    inv_area = 1.0 / float(r * r)

    # ---- dark channel: per-pixel min over (b, g, r)
    dark = jnp.minimum(jnp.minimum(i_ref[0, 2], i_ref[0, 1]), i_ref[0, 0])  # (h, w)

    # ---- 15x15 erosion with ones kernel, 1e4 geodesic border (pure VPU/XLU)
    d_im = _erode_const_border(dark, ks, GEODESIC_PAD)                      # (h, w)

    ah = ah_ref[...]     # (h, h)  bf16 integer reflect counts (row operator)
    awt = awt_ref[...]   # (w, w)  bf16 integer reflect counts (col operator, transposed)

    def blur_all(maps):
        """Normalized 60x60 box-blur of k maps: shared horizontal pass on the
        row-stack, then ONE fused vertical dot on the lane-stack (N = k*w)."""
        k = len(maps)
        s = jnp.concatenate(maps, axis=0).astype(jnp.bfloat16)              # (k*h, w)
        s = jnp.dot(s, awt, preferred_element_type=jnp.float32)             # horizontal
        s = jnp.concatenate([s[i * h:(i + 1) * h] for i in range(k)], axis=1)  # (h, k*w)
        s = jnp.dot(ah, s.astype(jnp.bfloat16),
                    preferred_element_type=jnp.float32)                     # vertical
        s = s * inv_area                                                    # f32 1/r^2
        return [s[:, i * w:(i + 1) * w] for i in range(k)]

    mean_I, mean_p, mean_Ip, mean_II = blur_all([d_im, dark, d_im * dark, d_im * d_im])

    cov_Ip = mean_Ip - mean_I * mean_p
    var_I = mean_II - mean_I * mean_I
    a = cov_Ip * pl.reciprocal(var_I + eps, approx=True)   # divide on the EUP
    b = mean_p - a * mean_I

    mean_a, mean_b = blur_all([a, b])
    q_ref[0, 0] = (mean_a * d_im + mean_b).astype(q_ref.dtype)


# --------------------------------- wrapper ------------------------------------

def dark_channel_prior(I, *, ks=KS, r=R, eps=EPS):
    """Forward pass of DarkChannelPrior.  I: (B, 3, H, W) float32 -> (B, 1, H, W)."""
    B, C, H, W = I.shape
    assert C == 3, "DarkChannelPrior expects a 3-channel (b, g, r) input"
    assert ks % 2 == 1
    assert min(H, W) > r // 2, "reflect pad of the 60x60 box blur needs H, W > 30"

    Ah = jnp.asarray(_box_reflect_counts(H, r), dtype=jnp.bfloat16)       # (H, H)
    AwT = jnp.asarray(_box_reflect_counts(W, r).T, dtype=jnp.bfloat16)    # (W, W)

    return pl.pallas_call(
        functools.partial(_dcp_kernel, ks=ks, r=r, eps=eps, h=H, w=W),
        out_shape=jax.ShapeDtypeStruct((B, 1, H, W), I.dtype),
        grid=(B,),
        in_specs=[
            pl.BlockSpec((1, 3, H, W), lambda i: (i, 0, 0, 0)),   # raw image block
            pl.BlockSpec((H, H), lambda i: (0, 0)),               # constant operator
            pl.BlockSpec((W, W), lambda i: (0, 0)),               # constant operator
        ],
        out_specs=pl.BlockSpec((1, 1, H, W), lambda i: (i, 0, 0, 0)),
        compiler_params=pltpu.CompilerParams(
            dimension_semantics=("parallel",),
        ),
    )(I, Ah, AwT)


# ----------------------------- pure-JAX reference -----------------------------

def _reference(I, *, ks=KS, r=R, eps=EPS):
    dark = jnp.min(I, axis=1)
    pe = ks // 2
    dp = jnp.pad(dark, ((0, 0), (pe, pe), (pe, pe)),
                 mode="constant", constant_values=GEODESIC_PAD)
    inf = jnp.array(jnp.inf, dp.dtype)
    d_im = lax.reduce_window(dp, inf, lax.min, (1, ks, ks), (1, 1, 1), "VALID")
    pf = (r - 1) // 2
    pr = (r - 1) - pf

    def blur(x):
        xp = jnp.pad(x, ((0, 0), (pf, pr), (pf, pr)), mode="reflect")
        zero = jnp.array(0.0, xp.dtype)
        return lax.reduce_window(xp, zero, lax.add, (1, r, r), (1, 1, 1), "VALID") / (r * r)

    mean_I = blur(d_im)
    mean_p = blur(dark)
    mean_Ip = blur(d_im * dark)
    cov_Ip = mean_Ip - mean_I * mean_p
    mean_II = blur(d_im * d_im)
    var_I = mean_II - mean_I * mean_I
    a = cov_Ip / (var_I + eps)
    b = mean_p - a * mean_I
    q = blur(a) * d_im + blur(b)
    return q[:, None, :, :]


if __name__ == "__main__":
    key = jax.random.PRNGKey(0)
    # spatial must exceed the 60x60 reflect pad (30); W = 128 keeps everything lane-dense.
    B, C, H, W = 2, 3, 64, 128
    I = jax.random.uniform(key, (B, C, H, W), dtype=jnp.float32)

    q = jax.block_until_ready(jax.jit(dark_channel_prior)(I))
    assert q.shape == (B, 1, H, W) and q.dtype == jnp.float32

    q_ref = jax.block_until_ready(_reference(I))
    np.testing.assert_allclose(np.asarray(q), np.asarray(q_ref), rtol=1e-2, atol=2e-3)

    print("KERNEL_OK")
</pallas_src>

<mosaic_0001>
module attributes {stable_mosaic.version = 11 : i64} {
  func.func @_dcp_kernel(%arg0: i32, %arg1: memref<1x3x64x128xf32, #tpu.memory_space<vmem>>, %arg2: memref<64x64xbf16, #tpu.memory_space<vmem>>, %arg3: memref<128x128xbf16, #tpu.memory_space<vmem>>, %arg4: memref<1x1x64x128xf32, #tpu.memory_space<vmem>>) attributes {dimension_semantics = [#tpu.dimension_semantics<parallel>], iteration_bounds = array<i64: 2>, scalar_prefetch = 0 : i64, scratch_operands = 0 : i64, tpu.core_type = #tpu.core_type<tc>, window_params = [{transform_indices = @transform_0, window_bounds = array<i64: 1, 3, 64, 128>}, {pipeline_mode = #tpu.pipeline_mode<synchronous>, transform_indices = @transform_1, window_bounds = array<i64: 64, 64>}, {pipeline_mode = #tpu.pipeline_mode<synchronous>, transform_indices = @transform_2, window_bounds = array<i64: 128, 128>}, {transform_indices = @transform_3, window_bounds = array<i64: 1, 1, 64, 128>}]} {
    %c0 = arith.constant 0 : index
    %c2 = arith.constant 2 : index
    %c0_0 = arith.constant 0 : index
    %c0_1 = arith.constant 0 : index
    %0 = vector.load %arg1[%c0, %c2, %c0_0, %c0_1] : memref<1x3x64x128xf32, #tpu.memory_space<vmem>>, vector<1x1x64x128xf32>
    %1 = vector.shape_cast %0 : vector<1x1x64x128xf32> to vector<64x128xf32>
    %c0_2 = arith.constant 0 : index
    %c1 = arith.constant 1 : index
    %c0_3 = arith.constant 0 : index
    %c0_4 = arith.constant 0 : index
    %2 = vector.load %arg1[%c0_2, %c1, %c0_3, %c0_4] : memref<1x3x64x128xf32, #tpu.memory_space<vmem>>, vector<1x1x64x128xf32>
    %3 = vector.shape_cast %2 : vector<1x1x64x128xf32> to vector<64x128xf32>
    %4 = arith.minimumf %1, %3 : vector<64x128xf32>
    %c0_5 = arith.constant 0 : index
    %c0_6 = arith.constant 0 : index
    %c0_7 = arith.constant 0 : index
    %c0_8 = arith.constant 0 : index
    %5 = vector.load %arg1[%c0_5, %c0_6, %c0_7, %c0_8] : memref<1x3x64x128xf32, #tpu.memory_space<vmem>>, vector<1x1x64x128xf32>
    %6 = vector.shape_cast %5 : vector<1x1x64x128xf32> to vector<64x128xf32>
    %7 = arith.minimumf %4, %6 : vector<64x128xf32>
    %8 = tpu.iota {dimensions = array<i32: 1>} : vector<64x128xi32>
    %c127_i32 = arith.constant 127 : i32
    %9 = tpu.dynamic_rotate %7 by %c127_i32 dim 1 : vector<64x128xf32>, i32 -> vector<64x128xf32>
    %c127_i32_9 = arith.constant 127 : i32
    %10 = tpu.dynamic_rotate %8 by %c127_i32_9 dim 1 : vector<64x128xi32>, i32 -> vector<64x128xi32>
    %11 = arith.subi %10, %8 : vector<64x128xi32>
    %12 = math.absi %11 : vector<64x128xi32>
    %c1_i32 = arith.constant 1 : i32
    %13 = vector.broadcast %c1_i32 : i32 to vector<64x128xi32>
    %14 = arith.cmpi eq, %12, %13 : vector<64x128xi32>
    %cst = arith.constant 1.000000e+04 : f32
    %15 = vector.broadcast %cst : f32 to vector<64x128xf32>
    %16 = arith.select %14, %9, %15 : vector<64x128xi1>, vector<64x128xf32>
    %17 = tpu.iota {dimensions = array<i32: 1>} : vector<64x128xi32>
    %c1_i32_10 = arith.constant 1 : i32
    %18 = tpu.dynamic_rotate %7 by %c1_i32_10 dim 1 : vector<64x128xf32>, i32 -> vector<64x128xf32>
    %c1_i32_11 = arith.constant 1 : i32
    %19 = tpu.dynamic_rotate %17 by %c1_i32_11 dim 1 : vector<64x128xi32>, i32 -> vector<64x128xi32>
    %20 = arith.subi %19, %17 : vector<64x128xi32>
    %21 = math.absi %20 : vector<64x128xi32>
    %c1_i32_12 = arith.constant 1 : i32
    %22 = vector.broadcast %c1_i32_12 : i32 to vector<64x128xi32>
    %23 = arith.cmpi eq, %21, %22 : vector<64x128xi32>
    %cst_13 = arith.constant 1.000000e+04 : f32
    %24 = vector.broadcast %cst_13 : f32 to vector<64x128xf32>
    %25 = arith.select %23, %18, %24 : vector<64x128xi1>, vector<64x128xf32>
    %26 = arith.minimumf %16, %25 : vector<64x128xf32>
    %27 = arith.minimumf %7, %26 : vector<64x128xf32>
    %28 = tpu.iota {dimensions = array<i32: 1>} : vector<64x128xi32>
    %c126_i32 = arith.constant 126 : i32
    %29 = tpu.dynamic_rotate %27 by %c126_i32 dim 1 : vector<64x128xf32>, i32 -> vector<64x128xf32>
    %c126_i32_14 = arith.constant 126 : i32
    %30 = tpu.dynamic_rotate %28 by %c126_i32_14 dim 1 : vector<64x128xi32>, i32 -> vector<64x128xi32>
    %31 = arith.subi %30, %28 : vector<64x128xi32>
    %32 = math.absi %31 : vector<64x128xi32>
    %c2_i32 = arith.constant 2 : i32
    %33 = vector.broadcast %c2_i32 : i32 to vector<64x128xi32>
    %34 = arith.cmpi eq, %32, %33 : vector<64x128xi32>
    %cst_15 = arith.constant 1.000000e+04 : f32
    %35 = vector.broadcast %cst_15 : f32 to vector<64x128xf32>
    %36 = arith.select %34, %29, %35 : vector<64x128xi1>, vector<64x128xf32>
    %37 = tpu.iota {dimensions = array<i32: 1>} : vector<64x128xi32>
    %c2_i32_16 = arith.constant 2 : i32
    %38 = tpu.dynamic_rotate %27 by %c2_i32_16 dim 1 : vector<64x128xf32>, i32 -> vector<64x128xf32>
    %c2_i32_17 = arith.constant 2 : i32
    %39 = tpu.dynamic_rotate %37 by %c2_i32_17 dim 1 : vector<64x128xi32>, i32 -> vector<64x128xi32>
    %40 = arith.subi %39, %37 : vector<64x128xi32>
    %41 = math.absi %40 : vector<64x128xi32>
    %c2_i32_18 = arith.constant 2 : i32
    %42 = vector.broadcast %c2_i32_18 : i32 to vector<64x128xi32>
    %43 = arith.cmpi eq, %41, %42 : vector<64x128xi32>
    %cst_19 = arith.constant 1.000000e+04 : f32
    %44 = vector.broadcast %cst_19 : f32 to vector<64x128xf32>
    %45 = arith.select %43, %38, %44 : vector<64x128xi1>, vector<64x128xf32>
    %46 = arith.minimumf %36, %45 : vector<64x128xf32>
    %47 = arith.minimumf %27, %46 : vector<64x128xf32>
    %48 = tpu.iota {dimensions = array<i32: 1>} : vector<64x128xi32>
    %c124_i32 = arith.constant 124 : i32
    %49 = tpu.dynamic_rotate %47 by %c124_i32 dim 1 : vector<64x128xf32>, i32 -> vector<64x128xf32>
    %c124_i32_20 = arith.constant 124 : i32
    %50 = tpu.dynamic_rotate %48 by %c124_i32_20 dim 1 : vector<64x128xi32>, i32 -> vector<64x128xi32>
    %51 = arith.subi %50, %48 : vector<64x128xi32>
    %52 = math.absi %51 : vector<64x128xi32>
    %c4_i32 = arith.constant 4 : i32
    %53 = vector.broadcast %c4_i32 : i32 to vector<64x128xi32>
    %54 = arith.cmpi eq, %52, %53 : vector<64x128xi32>
    %cst_21 = arith.constant 1.000000e+04 : f32
    %55 = vector.broadcast %cst_21 : f32 to vector<64x128xf32>
    %56 = arith.select %54, %49, %55 : vector<64x128xi1>, vector<64x128xf32>
    %57 = tpu.iota {dimensions = array<i32: 1>} : vector<64x128xi32>
    %c4_i32_22 = arith.constant 4 : i32
    %58 = tpu.dynamic_rotate %47 by %c4_i32_22 dim 1 : vector<64x128xf32>, i32 -> vector<64x128xf32>
    %c4_i32_23 = arith.constant 4 : i32
    %59 = tpu.dynamic_rotate %57 by %c4_i32_23 dim 1 : vector<64x128xi32>, i32 -> vector<64x128xi32>
    %60 = arith.subi %59, %57 : vector<64x128xi32>
    %61 = math.absi %60 : vector<64x128xi32>
    %c4_i32_24 = arith.constant 4 : i32
    %62 = vector.broadcast %c4_i32_24 : i32 to vector<64x128xi32>
    %63 = arith.cmpi eq, %61, %62 : vector<64x128xi32>
    %cst_25 = arith.constant 1.000000e+04 : f32
    %64 = vector.broadcast %cst_25 : f32 to vector<64x128xf32>
    %65 = arith.select %63, %58, %64 : vector<64x128xi1>, vector<64x128xf32>
    %66 = arith.minimumf %56, %65 : vector<64x128xf32>
    %67 = arith.minimumf %47, %66 : vector<64x128xf32>
    %68 = tpu.iota {dimensions = array<i32: 0>} : vector<64x128xi32>
    %c63_i32 = arith.constant 63 : i32
    %69 = tpu.dynamic_rotate %67 by %c63_i32 dim 0 : vector<64x128xf32>, i32 -> vector<64x128xf32>
    %c63_i32_26 = arith.constant 63 : i32
    %70 = tpu.dynamic_rotate %68 by %c63_i32_26 dim 0 : vector<64x128xi32>, i32 -> vector<64x128xi32>
    %71 = arith.subi %70, %68 : vector<64x128xi32>
    %72 = math.absi %71 : vector<64x128xi32>
    %c1_i32_27 = arith.constant 1 : i32
    %73 = vector.broadcast %c1_i32_27 : i32 to vector<64x128xi32>
    %74 = arith.cmpi eq, %72, %73 : vector<64x128xi32>
    %cst_28 = arith.constant 1.000000e+04 : f32
    %75 = vector.broadcast %cst_28 : f32 to vector<64x128xf32>
    %76 = arith.select %74, %69, %75 : vector<64x128xi1>, vector<64x128xf32>
    %77 = tpu.iota {dimensions = array<i32: 0>} : vector<64x128xi32>
    %c1_i32_29 = arith.constant 1 : i32
    %78 = tpu.dynamic_rotate %67 by %c1_i32_29 dim 0 : vector<64x128xf32>, i32 -> vector<64x128xf32>
    %c1_i32_30 = arith.constant 1 : i32
    %79 = tpu.dynamic_rotate %77 by %c1_i32_30 dim 0 : vector<64x128xi32>, i32 -> vector<64x128xi32>
    %80 = arith.subi %79, %77 : vector<64x128xi32>
    %81 = math.absi %80 : vector<64x128xi32>
    %c1_i32_31 = arith.constant 1 : i32
    %82 = vector.broadcast %c1_i32_31 : i32 to vector<64x128xi32>
    %83 = arith.cmpi eq, %81, %82 : vector<64x128xi32>
    %cst_32 = arith.constant 1.000000e+04 : f32
    %84 = vector.broadcast %cst_32 : f32 to vector<64x128xf32>
    %85 = arith.select %83, %78, %84 : vector<64x128xi1>, vector<64x128xf32>
    %86 = arith.minimumf %76, %85 : vector<64x128xf32>
    %87 = arith.minimumf %67, %86 : vector<64x128xf32>
    %88 = tpu.iota {dimensions = array<i32: 0>} : vector<64x128xi32>
    %c62_i32 = arith.constant 62 : i32
    %89 = tpu.dynamic_rotate %87 by %c62_i32 dim 0 : vector<64x128xf32>, i32 -> vector<64x128xf32>
    %c62_i32_33 = arith.constant 62 : i32
    %90 = tpu.dynamic_rotate %88 by %c62_i32_33 dim 0 : vector<64x128xi32>, i32 -> vector<64x128xi32>
    %91 = arith.subi %90, %88 : vector<64x128xi32>
    %92 = math.absi %91 : vector<64x128xi32>
    %c2_i32_34 = arith.constant 2 : i32
    %93 = vector.broadcast %c2_i32_34 : i32 to vector<64x128xi32>
    %94 = arith.cmpi eq, %92, %93 : vector<64x128xi32>
    %cst_35 = arith.constant 1.000000e+04 : f32
    %95 = vector.broadcast %cst_35 : f32 to vector<64x128xf32>
    %96 = arith.select %94, %89, %95 : vector<64x128xi1>, vector<64x128xf32>
    %97 = tpu.iota {dimensions = array<i32: 0>} : vector<64x128xi32>
    %c2_i32_36 = arith.constant 2 : i32
    %98 = tpu.dynamic_rotate %87 by %c2_i32_36 dim 0 : vector<64x128xf32>, i32 -> vector<64x128xf32>
    %c2_i32_37 = arith.constant 2 : i32
    %99 = tpu.dynamic_rotate %97 by %c2_i32_37 dim 0 : vector<64x128xi32>, i32 -> vector<64x128xi32>
    %100 = arith.subi %99, %97 : vector<64x128xi32>
    %101 = math.absi %100 : vector<64x128xi32>
    %c2_i32_38 = arith.constant 2 : i32
    %102 = vector.broadcast %c2_i32_38 : i32 to vector<64x128xi32>
    %103 = arith.cmpi eq, %101, %102 : vector<64x128xi32>
    %cst_39 = arith.constant 1.000000e+04 : f32
    %104 = vector.broadcast %cst_39 : f32 to vector<64x128xf32>
    %105 = arith.select %103, %98, %104 : vector<64x128xi1>, vector<64x128xf32>
    %106 = arith.minimumf %96, %105 : vector<64x128xf32>
    %107 = arith.minimumf %87, %106 : vector<64x128xf32>
    %108 = tpu.iota {dimensions = array<i32: 0>} : vector<64x128xi32>
    %c60_i32 = arith.constant 60 : i32
    %109 = tpu.dynamic_rotate %107 by %c60_i32 dim 0 : vector<64x128xf32>, i32 -> vector<64x128xf32>
    %c60_i32_40 = arith.constant 60 : i32
    %110 = tpu.dynamic_rotate %108 by %c60_i32_40 dim 0 : vector<64x128xi32>, i32 -> vector<64x128xi32>
    %111 = arith.subi %110, %108 : vector<64x128xi32>
    %112 = math.absi %111 : vector<64x128xi32>
    %c4_i32_41 = arith.constant 4 : i32
    %113 = vector.broadcast %c4_i32_41 : i32 to vector<64x128xi32>
    %114 = arith.cmpi eq, %112, %113 : vector<64x128xi32>
    %cst_42 = arith.constant 1.000000e+04 : f32
    %115 = vector.broadcast %cst_42 : f32 to vector<64x128xf32>
    %116 = arith.select %114, %109, %115 : vector<64x128xi1>, vector<64x128xf32>
    %117 = tpu.iota {dimensions = array<i32: 0>} : vector<64x128xi32>
    %c4_i32_43 = arith.constant 4 : i32
    %118 = tpu.dynamic_rotate %107 by %c4_i32_43 dim 0 : vector<64x128xf32>, i32 -> vector<64x128xf32>
    %c4_i32_44 = arith.constant 4 : i32
    %119 = tpu.dynamic_rotate %117 by %c4_i32_44 dim 0 : vector<64x128xi32>, i32 -> vector<64x128xi32>
    %120 = arith.subi %119, %117 : vector<64x128xi32>
    %121 = math.absi %120 : vector<64x128xi32>
    %c4_i32_45 = arith.constant 4 : i32
    %122 = vector.broadcast %c4_i32_45 : i32 to vector<64x128xi32>
    %123 = arith.cmpi eq, %121, %122 : vector<64x128xi32>
    %cst_46 = arith.constant 1.000000e+04 : f32
    %124 = vector.broadcast %cst_46 : f32 to vector<64x128xf32>
    %125 = arith.select %123, %118, %124 : vector<64x128xi1>, vector<64x128xf32>
    %126 = arith.minimumf %116, %125 : vector<64x128xf32>
    %127 = arith.minimumf %107, %126 : vector<64x128xf32>
    %c0_47 = arith.constant 0 : index
    %c0_48 = arith.constant 0 : index
    %128 = vector.load %arg2[%c0_47, %c0_48] : memref<64x64xbf16, #tpu.memory_space<vmem>>, vector<64x64xbf16>
    %c0_49 = arith.constant 0 : index
    %c0_50 = arith.constant 0 : index
    %129 = vector.load %arg3[%c0_49, %c0_50] : memref<128x128xbf16, #tpu.memory_space<vmem>>, vector<128x128xbf16>
    %130 = arith.mulf %127, %7 : vector<64x128xf32>
    %131 = arith.mulf %127, %127 : vector<64x128xf32>
    %132 = tpu.concatenate %127, %7, %130, %131 in 0 : vector<64x128xf32>, vector<64x128xf32>, vector<64x128xf32>, vector<64x128xf32> -> vector<256x128xf32>
    %133 = arith.truncf %132 : vector<256x128xf32> to vector<256x128xbf16>
    %cst_51 = arith.constant dense<0.000000e+00> : vector<256x128xf32>
    %134 = tpu.matmul %133, %129, %cst_51 {dimension_numbers = #tpu.dot_dimension_numbers<[1], [0], [0], [1], [0, 0, 1, 1], [], []>} : vector<256x128xbf16>, vector<128x128xbf16>, vector<256x128xf32> -> vector<256x128xf32>
    %135 = vector.extract_strided_slice %134 {offsets = [0, 0], sizes = [64, 128], strides = [1, 1]} : vector<256x128xf32> to vector<64x128xf32>
    %136 = vector.extract_strided_slice %134 {offsets = [64, 0], sizes = [64, 128], strides = [1, 1]} : vector<256x128xf32> to vector<64x128xf32>
    %137 = vector.extract_strided_slice %134 {offsets = [128, 0], sizes = [64, 128], strides = [1, 1]} : vector<256x128xf32> to vector<64x128xf32>
    %138 = vector.extract_strided_slice %134 {offsets = [192, 0], sizes = [64, 128], strides = [1, 1]} : vector<256x128xf32> to vector<64x128xf32>
    %139 = tpu.concatenate %135, %136, %137, %138 in 1 : vector<64x128xf32>, vector<64x128xf32>, vector<64x128xf32>, vector<64x128xf32> -> vector<64x512xf32>
    %140 = arith.truncf %139 : vector<64x512xf32> to vector<64x512xbf16>
    %cst_52 = arith.constant dense<0.000000e+00> : vector<64x512xf32>
    %141 = tpu.matmul %128, %140, %cst_52 {dimension_numbers = #tpu.dot_dimension_numbers<[1], [0], [0], [1], [0, 0, 1, 1], [], []>} : vector<64x64xbf16>, vector<64x512xbf16>, vector<64x512xf32> -> vector<64x512xf32>
    %cst_53 = arith.constant 2.77777785E-4 : f32
    %142 = vector.broadcast %cst_53 : f32 to vector<64x512xf32>
    %143 = arith.mulf %141, %142 : vector<64x512xf32>
    %144 = vector.extract_strided_slice %143 {offsets = [0, 0], sizes = [64, 128], strides = [1, 1]} : vector<64x512xf32> to vector<64x128xf32>
    %145 = vector.extract_strided_slice %143 {offsets = [0, 128], sizes = [64, 128], strides = [1, 1]} : vector<64x512xf32> to vector<64x128xf32>
    %146 = vector.extract_strided_slice %143 {offsets = [0, 256], sizes = [64, 128], strides = [1, 1]} : vector<64x512xf32> to vector<64x128xf32>
    %147 = vector.extract_strided_slice %143 {offsets = [0, 384], sizes = [64, 128], strides = [1, 1]} : vector<64x512xf32> to vector<64x128xf32>
    %148 = arith.mulf %144, %145 : vector<64x128xf32>
    %149 = arith.subf %146, %148 : vector<64x128xf32>
    %150 = arith.mulf %144, %144 : vector<64x128xf32>
    %151 = arith.subf %147, %150 : vector<64x128xf32>
    %cst_54 = arith.constant 9.99999974E-5 : f32
    %152 = vector.broadcast %cst_54 : f32 to vector<64x128xf32>
    %153 = arith.addf %151, %152 : vector<64x128xf32>
    %154 = tpu.reciprocal %153 {approx = true} : vector<64x128xf32> -> vector<64x128xf32>
    %155 = arith.mulf %149, %154 : vector<64x128xf32>
    %156 = arith.mulf %155, %144 : vector<64x128xf32>
    %157 = arith.subf %145, %156 : vector<64x128xf32>
    %158 = tpu.concatenate %155, %157 in 0 : vector<64x128xf32>, vector<64x128xf32> -> vector<128x128xf32>
    %159 = arith.truncf %158 : vector<128x128xf32> to vector<128x128xbf16>
    %cst_55 = arith.constant dense<0.000000e+00> : vector<128x128xf32>
    %160 = tpu.matmul %159, %129, %cst_55 {dimension_numbers = #tpu.dot_dimension_numbers<[1], [0], [0], [1], [0, 0, 1, 1], [], []>} : vector<128x128xbf16>, vector<128x128xbf16>, vector<128x128xf32> -> vector<128x128xf32>
    %161 = vector.extract_strided_slice %160 {offsets = [0, 0], sizes = [64, 128], strides = [1, 1]} : vector<128x128xf32> to vector<64x128xf32>
    %162 = vector.extract_strided_slice %160 {offsets = [64, 0], sizes = [64, 128], strides = [1, 1]} : vector<128x128xf32> to vector<64x128xf32>
    %163 = tpu.concatenate %161, %162 in 1 : vector<64x128xf32>, vector<64x128xf32> -> vector<64x256xf32>
    %164 = arith.truncf %163 : vector<64x256xf32> to vector<64x256xbf16>
    %cst_56 = arith.constant dense<0.000000e+00> : vector<64x256xf32>
    %165 = tpu.matmul %128, %164, %cst_56 {dimension_numbers = #tpu.dot_dimension_numbers<[1], [0], [0], [1], [0, 0, 1, 1], [], []>} : vector<64x64xbf16>, vector<64x256xbf16>, vector<64x256xf32> -> vector<64x256xf32>
    %cst_57 = arith.constant 2.77777785E-4 : f32
    %166 = vector.broadcast %cst_57 : f32 to vector<64x256xf32>
    %167 = arith.mulf %165, %166 : vector<64x256xf32>
    %168 = vector.extract_strided_slice %167 {offsets = [0, 0], sizes = [64, 128], strides = [1, 1]} : vector<64x256xf32> to vector<64x128xf32>
    %169 = vector.extract_strided_slice %167 {offsets = [0, 128], sizes = [64, 128], strides = [1, 1]} : vector<64x256xf32> to vector<64x128xf32>
    %170 = arith.mulf %168, %127 : vector<64x128xf32>
    %171 = arith.addf %170, %169 : vector<64x128xf32>
    %c0_58 = arith.constant 0 : index
    %c0_59 = arith.constant 0 : index
    %c0_60 = arith.constant 0 : index
    %c0_61 = arith.constant 0 : index
    %172 = vector.load %arg4[%c0_58, %c0_59, %c0_60, %c0_61] : memref<1x1x64x128xf32, #tpu.memory_space<vmem>>, vector<1x1x64x128xf32>
    %173 = vector.shape_cast %172 : vector<1x1x64x128xf32> to vector<64x128xf32>
    %174 = vector.shape_cast %171 : vector<64x128xf32> to vector<1x1x64x128xf32>
    tpu.vector_store %arg4[%c0_58, %c0_59, %c0_60, %c0_61], %174 {strides = array<i32>} : memref<1x1x64x128xf32, #tpu.memory_space<vmem>>, vector<1x1x64x128xf32>,
    return
  }
  func.func @transform_0(%arg0: i32) -> (i32, i32, i32, i32) {
    %c0_i32 = arith.constant 0 : i32
    %c0_i32_0 = arith.constant 0 : i32
    %c0_i32_1 = arith.constant 0 : i32
    %c0_i32_2 = arith.constant 0 : i32
    return %arg0, %c0_i32, %c0_i32_0, %c0_i32_1 : i32, i32, i32, i32
  }
  func.func @transform_1(%arg0: i32) -> (i32, i32) {
    %c0_i32 = arith.constant 0 : i32
    %c0_i32_0 = arith.constant 0 : i32
    %c0_i32_1 = arith.constant 0 : i32
    return %c0_i32, %c0_i32_0 : i32, i32
  }
  func.func @transform_2(%arg0: i32) -> (i32, i32) {
    %c0_i32 = arith.constant 0 : i32
    %c0_i32_0 = arith.constant 0 : i32
    %c0_i32_1 = arith.constant 0 : i32
    return %c0_i32, %c0_i32_0 : i32, i32
  }
  func.func @transform_3(%arg0: i32) -> (i32, i32, i32, i32) {
    %c0_i32 = arith.constant 0 : i32
    %c0_i32_0 = arith.constant 0 : i32
    %c0_i32_1 = arith.constant 0 : i32
    %c0_i32_2 = arith.constant 0 : i32
    return %arg0, %c0_i32, %c0_i32_0, %c0_i32_1 : i32, i32, i32, i32
  }
}

</mosaic_0001>

<bundles_post_ra>
// kernel: dark_channel_prior.1
= control target key start
LH: loop header
LB: loop body
LE: loop exit
PB: predicated region body
PF: predicated region fallthrough
CT: control target
= control target key end

     0   :  { %8 = vsyncpa [#allocation3], 0  ;;  %s3878_s0 = inlined_call_operand.hbm [shape: f32[2,3,64,128], index: 0, kind: input, shape index: {}]   ;;  %s3879_s1 = inlined_call_operand.hbm [shape: bf16[64,64], index: 1, kind: input, shape index: {}]   ;;  %s3880_s2 = inlined_call_operand.hbm [shape: bf16[128,128], index: 2, kind: input, shape index: {}]   ;;  %s3881_s3 = inlined_call_operand.hbm [shape: f32[2,1,64,128], index: 3, kind: output, shape index: {}]  }
   0x1   :  { %10 = vsyncpa [#allocation3 + $0x1], 0 }
   0x2   :  { %11 = vsyncpa [#allocation6], 0 }
   0x3   :  { %12 = vsyncpa [#allocation4], 0 }
   0x4   :  { %14 = vsyncpa [#allocation4 + $0x1], 0  ;;  %s2455_s12 = smov 0   ;;  %s2457_s13 = smov 0  }
   0x5   :  { %s2459_s14 = smov 0   ;;  %s2461_s15 = smov 0  }
   0x6 LB: > { %s2476_s16 = sadd.s32 4294967295, %s2416_s15   ;;  %s1903_s17 = sadd.s32 4294967294, %s2416_s15   ;;  %s2416_s15 = sphi %s2461_s15, %s4045_s15   ;;  %s2412_s14 = sphi %s2459_s14, %s4044_s14   ;;  %s2408_s13 = sphi %s2457_s13, %s4043_s13   ;;  %s2404_s12 = sphi %s2455_s12, %s4042_s12  }
   0x7   : > { %p40_p0 = scmp.ne.s32.totalorder %s2408_s13, %s2404_s12  ;;  %p3882_p1 = scmp.eq.s32.totalorder %s2476_s16, 0 }
   0x8   : > { %p112_p3 = scmp.eq.s32.totalorder %s1903_s17, 1  ;;  %p1904_p5 = scmp.ge.s32.totalorder %s2416_s15, 1 }
   0x9   : > { %p2485_p4 = por %p3882_p1, %p40_p0  ;;  %p119_p7 = scmp.lt.s32.totalorder %s2416_s15, 3 }
   0xa   : > { %p2490_p6 = por %p112_p3, %p40_p0  ;;  %s2418_s21 = smov [#allocation5]  }
   0xb   : > { %s3936_s18 = scalar_select %p2485_p4, 1, 0 }
   0xc   : > { %s3937_s19 = scalar_select %p2490_p6, 1, 0 }
   0xd   : > { %p2495_p8 = pnand %p1904_p5, %p119_p7  ;;  %s131_s22 = sshll.u32 %s2418_s21, 4  ;;  %s2499_s22 = int_to_ptr.vmem [resolvable:$true] %s131_s22 }
   0xe   : > { %s2419_s24 = smov [#allocation7]   ;;  %s2260_s28 = scalar_lea.hbm %s3879_s1, 512 }
   0xf   : > { %p2156_p9 = pneg %p2495_p8  ;;  %s144_s25 = sshll.u32 %s2419_s24, 4  ;;  %s2510_s25 = int_to_ptr.vmem [resolvable:$true] %s144_s25 }
  0x10   : > { %p2261_p12 = scmp.ne.s32.totalorder %s3879_s1, %s2260_s28  ;;  %p2267_p5 = scmp.lt.u32.totalorder %s2260_s28, %s3879_s1 }
  0x11   : > { %p2506_p11 = pnand %p2156_p9, %p3882_p1 }
  0x13   : > { %p2262_p13 = pneg %p2506_p11 }
  0x15   : > { %p2263_p0 = pnand %p2262_p13, %p2261_p12 }
  0x17   : > { %p2264_p3 = pneg %p2263_p0 }
  0x19   : > { %p2269_p7 = pnand %p2267_p5, %p2264_p3 }
  0x1b   : > { %2272 = shalt.err (!%p2269_p7)
}
  0x1c   : > { %s2273_s6 = scalar_lea.vmem %s2499_s22, 512  ;;  %p2281_p2 = scmp.lt.s32.totalorder %s2499_s22, %s2499_s22 }
  0x1d   : > { %p2274_p9 = scmp.ne.s32.totalorder %s2499_s22, %s2273_s6  ;;  %p2282_p12 = scmp.lt.s32.totalorder %s2273_s6, %s2273_s6 }
  0x1f   : > { %p2276_p10 = pnand %p2274_p9, %p2262_p13  ;;  %p2283_p0 = por %p2282_p12, %p2281_p2 }
  0x21   : > { %p2277_p1 = pneg %p2276_p10 }
  0x23   : > { %p2284_p6 = pnand %p2283_p0, %p2277_p1 }
  0x25   : > { %2287 = shalt.err (!%p2284_p6)
}
  0x26   : > { %s2420_s7 = smov 64   ;;  %s2421_s8 = smov 4  }
  0x27   : > { %2159 = dma.hbm_to_vmem [thread:$0]  (!%p2506_p11), %s3879_s1, 512, %s2499_s22, [#allocation6], %s2420_s7, %s2420_s7, %s2421_s8  }
  0x28   : > { %s2288_s21 = scalar_lea.hbm %s3880_s2, 1024 }
  0x29   : > { %p2289_p2 = scmp.ne.s32.totalorder %s3880_s2, %s2288_s21  ;;  %p2295_p10 = scmp.lt.u32.totalorder %s2288_s21, %s3880_s2 }
  0x2b   : > { %p2291_p1 = pnand %p2289_p2, %p2262_p13 }
  0x2d   : > { %p2292_p6 = pneg %p2291_p1 }
  0x2f   : > { %p2297_p3 = pnand %p2295_p10, %p2292_p6 }
  0x31   : > { %2300 = shalt.err (!%p2297_p3)
}
  0x32   : > { %s2301_s22 = scalar_lea.vmem %s2510_s25, 1024  ;;  %p2309_p12 = scmp.lt.s32.totalorder %s2510_s25, %s2510_s25 }
  0x33   : > { %p2302_p5 = scmp.ne.s32.totalorder %s2510_s25, %s2301_s22  ;;  %p2310_p0 = scmp.lt.s32.totalorder %s2301_s22, %s2301_s22 }
  0x35   : > { %p2304_p7 = pnand %p2302_p5, %p2262_p13  ;;  %p2311_p2 = por %p2310_p0, %p2309_p12 }
  0x37   : > { %p2305_p9 = pneg %p2304_p7 }
  0x39   : > { %p2312_p1 = pnand %p2311_p2, %p2305_p9 }
  0x3b   : > { %2315 = shalt.err (!%p2312_p1)
}
  0x3c   : > { %2162 = dma.hbm_to_vmem [thread:$0]  (!%p2506_p11), %s3880_s2, 1024, %s2510_s25, [#allocation6], %s2420_s7, %s2420_s7, %s2421_s8  }
  0x3d   : > { %s2565_s4 = sadd.s32 1, %s2416_s15   ;;  %s27_s23 = sadd.s32 1, %s2412_s14 }
  0x3e   : > { %s24_s5 = ssub.s32 %s2416_s15, %s2565_s4  ;;  %p34_p13 = scmp.ne.s32.totalorder %s2412_s14, %s2408_s13 }
  0x3f   : > { %p25_p6 = scmp.eq.s32.totalorder %s24_s5, 0  ;;  %p35_p10 = scmp.eq.s32.totalorder %s2416_s15, 0 }
  0x40   : > { %p3940_p3 = scmp.eq.s32.totalorder %s2476_s16, 1  ;;  %p2173_p7 = scmp.lt.s32.totalorder %s2416_s15, 2 }
  0x41   : > { %s2581_s9 = scalar_select %p25_p6, %s2412_s14, %s27_s23  }
  0x42   : > { %p2575_p5 = por %p3940_p3, %p34_p13  ;;  %p36_p9 = por %p35_p10, %p34_p13 }
  0x43   : > { %s158_s10 = sand.u32 1, %s2412_s14   ;;  %s2142_s25 = smul.u32 3072, %s2416_s15 }
  0x44   : > { %s3941_s6 = scalar_select %p2575_p5, 1, 0 }
  0x45   : > { %s2141_s11 = smul.u32 192, %s158_s10  ;;  %p2585_p11 = pnand %p2173_p7, %p36_p9 }
  0x46   : > { %s2592_s21 = scalar_lea.hbm %s3878_s0, %s2142_s25  ;;  %s2596_s27 = scalar_lea.sflag [#allocation3], %s158_s10 }
  0x47   : > { %s162_s24 = scalar_lea.vmem [#allocation2], %s2141_s11  ;;  %s2316_s28 = scalar_lea.hbm %s2592_s21, 3072 }
  0x48   : > { %s169_s26 = sshll.u32 %s162_s24, 4  ;;  %p2317_p12 = scmp.ne.s32.totalorder %s2592_s21, %s2316_s28  ;;  %s2594_s26 = int_to_ptr.vmem [resolvable:$true] %s169_s26 }
  0x49   : > { %p2318_p0 = pneg %p2585_p11  ;;  %s2321_s30 = scalar_lea.hbm %s3878_s0, 6144 }
  0x4a   : > { %p2322_p13 = scmp.lt.u32.totalorder %s2592_s21, %s3878_s0  ;;  %p2323_p6 = scmp.lt.u32.totalorder %s2321_s30, %s2316_s28 }
  0x4b   : > { %p2319_p2 = pnand %p2318_p0, %p2317_p12  ;;  %p2325_p3 = scmp.lt.u32.totalorder %s2316_s28, %s2592_s21 }
  0x4c   : > { %p2324_p10 = por %p2323_p6, %p2322_p13 }
  0x4d   : > { %p2320_p1 = pneg %p2319_p2 }
  0x4e   : > { %p2326_p7 = por %p2325_p3, %p2324_p10 }
  0x50   : > { %p2327_p9 = pnand %p2326_p7, %p2320_p1 }
  0x52   : > { %2330 = shalt.err (!%p2327_p9)
}
  0x53   : > { %s2331_s10 = scalar_lea.vmem %s2594_s26, 3072  ;;  %s2422_s11 = smov [#allocation2]  }
  0x54   : > { %p2332_p12 = scmp.ne.s32.totalorder %s2594_s26, %s2331_s10  ;;  %s2336_s25 = sshll.u32 %s2422_s11, 4  ;;  %s2337_s25 = int_to_ptr.vmem [resolvable:$false] %s2336_s25 }
  0x55   : > { %s2338_s8 = scalar_lea.vmem %s2337_s25, 6144  ;;  %p2339_p4 = scmp.lt.s32.totalorder %s2594_s26, %s2337_s25 }
  0x56   : > { %p2334_p2 = pnand %p2332_p12, %p2318_p0  ;;  %p2340_p13 = scmp.lt.s32.totalorder %s2338_s8, %s2331_s10 }
  0x58   : > { %p2335_p5 = pneg %p2334_p2  ;;  %p2341_p6 = por %p2340_p13, %p2339_p4 }
  0x5a   : > { %p2342_p10 = pnand %p2341_p6, %p2335_p5 }
  0x5c   : > { %2345 = shalt.err (!%p2342_p10)
}
  0x5d   : > { %s2423_s17 = smov 128   ;;  %s2424_s24 = smov 8  }
  0x5e   : > { %2166 = dma.hbm_to_vmem [thread:$0]  (!%p2585_p11), %s2592_s21, 3072, %s2594_s26, %s2596_s27, %s2423_s17, %s2423_s17, %s2424_s24  }
  0x5f   : > { %181 = sbr.rel (%p2495_p8) target bundleno = 1622 (0x656), region = 32 }
  0x66   : > { %s2627_s28 = sand.u32 1, %s2408_s13   ;;  %p3943_p4 = scmp.ne.s32.totalorder %s3936_s18, 0 }
  0x67   : > { %s2143_s22 = smul.u32 192, %s2627_s28  ;;  %s184_s29 = scalar_lea.sflag [#allocation3], %s2627_s28 }
  0x69   : > { %s2631_s30 = scalar_lea.vmem [#allocation2], %s2143_s22 }
  0x6a   : > { %2391 = dma.done.wait (%p3943_p4), %s184_s29, 3072  }
  0x6b   : > { %2393 = vsyncadd (%p3943_p4), %s184_s29, 4294964224  ;;  %p3944_p5 = scmp.eq.s32.totalorder %s2476_s16, 0 }
  0x6d   : > { %2395 = dma.done.wait (%p3944_p5), [#allocation6], 1536   ;;  %p3945_p8 = pmov %p3944_p5 }
  0x6e   : > { %v261_v0 = vlaneseq  ;;  %s2425_s18 = smov 127   ;;  %v1915_v2 = vld [vmem:[%s2631_s30 + $0x90] sm:$0xff]  ;;  %s2426_s20 = smov 1   ;;  %v1913_v6 = vld [vmem:[%s2631_s30 + $0x80] sm:$0xff]  ;;  %v1914_v15 = vld [vmem:[%s2631_s30 + $0x88] sm:$0xff] }
  0x6f   : > { %2397 = vsyncadd (%p3945_p8), [#allocation6], 4294965760  ;;  %v1923_v3 = vld [vmem:[%s2631_s30 + $0x50] sm:$0xff]  ;;  %v1921_v7 = vld [vmem:[%s2631_s30 + $0x40] sm:$0xff]  ;;  %s2427_s7 = smov 126   ;;  %s2428_s21 = smov 2  }
  0x70   : > { %v2642_v1 = vand.u32 127, %v261_v0  ;;  %v247_v4 = vld [vmem:[%s2631_s30 + $0x10] sm:$0xff]  ;;  %v239_v5 = vmin.f32 %v1915_v2, %v1923_v3  ;;  %v245_v8 = vld [vmem:[%s2631_s30] sm:$0xff]  ;;  %v237_v9 = vmin.f32 %v1913_v6, %v1921_v7  ;;  %v1922_v16 = vld [vmem:[%s2631_s30 + $0x48] sm:$0xff]  ;;  %s2429_s26 = smov 124   ;;  %s2430_s27 = smov 4  }
  0x71   : > { %v1917_v10 = vld [vmem:[%s2631_s30 + $0xa0] sm:$0xff]  ;;  %v246_v17 = vld [vmem:[%s2631_s30 + $0x8] sm:$0xff]  ;;  %v238_v19 = vmin.f32 %v1914_v15, %v1922_v16  ;;  %v1919_v20 = vld [vmem:[%s2631_s30 + $0xb0] sm:$0xff]  ;;  %s1912_s23 = sshll.u32 %s2627_s28, 6  ;;  %s2012_s11 = sshll.u32 %s2476_s16, 10 }
  0x72   : > { %279 = vrot.lane.b32.xlu0 %v2642_v1, %s2425_s18  ;;  %v1925_v11 = vld [vmem:[%s2631_s30 + $0x60] sm:$0xff]  ;;  %v2657_v13 = vmin.f32 %v239_v5, %v247_v4  ;;  %v2662_v18 = vmin.f32 %v237_v9, %v245_v8  ;;  %v1927_v21 = vld [vmem:[%s2631_s30 + $0x70] sm:$0xff]  ;;  %v1916_v24 = vld [vmem:[%s2631_s30 + $0x98] sm:$0xff]  ;;  %s3813_s5 = scalar_lea.vmem [#allocation8], %s1912_s23  ;;  %s3832_s17 = scalar_lea.hbm %s3881_s3, %s2012_s11 }
  0x73   : > { %v249_v12 = vld [vmem:[%s2631_s30 + $0x20] sm:$0xff]  ;;  %v241_v14 = vmin.f32 %v1917_v10, %v1925_v11  ;;  %v243_v23 = vmin.f32 %v1919_v20, %v1927_v21  ;;  %v1924_v25 = vld [vmem:[%s2631_s30 + $0x58] sm:$0xff]  ;;  %v2674_v26 = vmin.f32 %v238_v19, %v246_v17  ;;  %v251_v27 = vld [vmem:[%s2631_s30 + $0x30] sm:$0xff]  ;;  %s1811_s10 = sshll.u32 %s3813_s5, 4  ;;  %s1798_s24 = scalar_lea.sflag [#allocation4], %s2627_s28  ;;  %s3826_s10 = int_to_ptr.vmem [resolvable:$true] %s1811_s10 }
  0x74   : > { %3946 = vst [vmem:[#allocation12_spill] sm:$0xff] %v2657_v13  ;;  %3947 = vst [vmem:[#allocation13_spill] sm:$0xff] %v2662_v18  ;;  %263 = vrot.lane.b32.xlu1 %v2662_v18, %s2425_s18  ;;  %v240_v28 = vmin.f32 %v1916_v24, %v1924_v25  ;;  %v248_v29 = vld [vmem:[%s2631_s30 + $0x18] sm:$0xff]  ;;  %v1918_v30 = vld [vmem:[%s2631_s30 + $0xa8] sm:$0xff]  ;;  %s2346_s22 = scalar_lea.vmem %s3826_s10, 1024  ;;  %p4039_p0 = scmp.ne.s32.totalorder %s3941_s6, 0 }
  0x75   : > { %v2668_v22 = vmin.f32 %v241_v14, %v249_v12  ;;  %3949 = vst [vmem:[#allocation15_spill] sm:$0xff] %v2674_v26  ;;  %v1926_v31 = vld [vmem:[%s2631_s30 + $0x68] sm:$0xff]  ;;  %v2682_v32 = vmin.f32 %v243_v23, %v251_v27  ;;  %v1920_v34 = vld [vmem:[%s2631_s30 + $0xb8] sm:$0xff]  ;;  %p2347_p11 = scmp.ne.s32.totalorder %s3826_s10, %s2346_s22  ;;  %s2432_s16 = smov [#allocation8]  }
  0x76   : > { %310 = vrot.lane.b32.xlu0 %v2642_v1, %s2426_s20  ;;  %v250_v33 = vld [vmem:[%s2631_s30 + $0x28] sm:$0xff]  ;;  %v2688_v35 = vmin.f32 %v240_v28, %v248_v29  ;;  %v242_v36 = vmin.f32 %v1918_v30, %v1926_v31  ;;  %v1928_v37 = vld [vmem:[%s2631_s30 + $0x78] sm:$0xff]  ;;  %s2350_s29 = sshll.u32 %s2432_s16, 4  ;;  %s2351_s29 = int_to_ptr.vmem [resolvable:$false] %s2350_s29 }
  0x77   : > { %3948 = vst [vmem:[#allocation14_spill] sm:$0xff] %v2668_v22  ;;  %3950 = vst [vmem:[#allocation16_spill] sm:$0xff] %v2682_v32  ;;  %v252_v38 = vld [vmem:[%s2631_s30 + $0x38] sm:$0xff]  ;;  %v244_v40 = vmin.f32 %v1920_v34, %v1928_v37  ;;  %p2348_p1 = pnand %p2347_p11, %p4039_p0  ;;  %s2352_s30 = scalar_lea.vmem %s2351_s29, 2048 }
  0x78   : > { %265 = vrot.lane.b32.xlu1 %v2674_v26, %s2425_s18  ;;  %3951 = vst [vmem:[#allocation17_spill] sm:$0xff] %v2688_v35  ;;  %v2696_v39 = vmin.f32 %v242_v36, %v250_v33  ;;  %p2353_p7 = scmp.lt.s32.totalorder %s3826_s10, %s2351_s29  ;;  %p2354_p9 = scmp.lt.s32.totalorder %s2352_s30, %s2346_s22 }
  0x79   : > { %v2702_v41 = vmin.f32 %v244_v40, %v252_v38  ;;  %p2349_p3 = pneg %p2348_p1 }
  0x7a   : > { %267 = vrot.lane.b32.xlu0 %v2657_v13, %s2425_s18  ;;  %3952 = vst [vmem:[#allocation18_spill] sm:$0xff] %v2696_v39  ;;  %p2355_p12 = por %p2354_p9, %p2353_p7 }
  0x7b   : > { %3953 = vst [vmem:[#allocation19_spill] sm:$0xff] %v2702_v41 }
  0x7c   : > { %269 = vrot.lane.b32.xlu1 %v2688_v35, %s2425_s18  ;;  %p2356_p2 = pnand %p2355_p12, %p2349_p3 }
  0x7e   : > { %271 = vrot.lane.b32.xlu0 %v2668_v22, %s2425_s18 }
  0x80   : > { %273 = vrot.lane.b32.xlu1 %v2696_v39, %s2425_s18 }
  0x82   : > { %275 = vrot.lane.b32.xlu0 %v2682_v32, %s2425_s18 }
  0x84   : > { %277 = vrot.lane.b32.xlu1 %v2702_v41, %s2425_s18 }
  0x86   : > { %294 = vrot.lane.b32.xlu0 %v2662_v18, %s2426_s20 }
  0x88   : > { %296 = vrot.lane.b32.xlu1 %v2674_v26, %s2426_s20 }
  0x8a   : > { %298 = vrot.lane.b32.xlu0 %v2657_v13, %s2426_s20 }
  0x8c   : > { %300 = vrot.lane.b32.xlu1 %v2688_v35, %s2426_s20 }
  0x8e   : > { %302 = vrot.lane.b32.xlu0 %v2668_v22, %s2426_s20 }
  0x90   : > { %304 = vrot.lane.b32.xlu1 %v2696_v39, %s2426_s20 }
  0x92   : > { %306 = vrot.lane.b32.xlu0 %v2682_v32, %s2426_s20 }
  0x94   : > { %308 = vrot.lane.b32.xlu1 %v2702_v41, %s2426_s20 }
  0x96   : > { %357 = vrot.lane.b32.xlu0 %v2642_v1, %s2427_s7 }
  0x98   : > { %388 = vrot.lane.b32.xlu1 %v2642_v1, %s2428_s21 }
  0xe4   : > { %v280_v42 = vpop.permute.xlu0 %279 }
  0xe5   : > { %v281_v44 = vsub.s32 %v280_v42, %v2642_v1 }
  0xe6   : > { %v264_v47 = vpop.permute.xlu1 %263 }
  0xe7   : > { %v283_v48 = vsub.s32 0, %v281_v44 }
  0xe8   : > { %v311_v43 = vpop.permute.xlu0 %310 }
  0xe9   : > { %v312_v45 = vsub.s32 %v311_v43, %v2642_v1  ;;  %v1929_v52 = vmin.u32 %v283_v48, %v281_v44 }
  0xea   : > { %v266_v51 = vpop.permute.xlu1 %265 }
  0xeb   : > { %v314_v49 = vsub.s32 0, %v312_v45  ;;  %vm285_vm0 = vcmp.eq.s32.totalorder %v1929_v52, 1 }
  0xec   : > { %v268_v46 = vpop.permute.xlu0 %267  ;;  %v286_v57 = vsel %vm285_vm0, %v264_v47, 10000.0  ;;  %v287_v10 = vsel %vm285_vm0, %v266_v51, 10000.0 }
  0xed   : > { %v1930_v53 = vmin.u32 %v314_v49, %v312_v45  ;;  %v288_v63 = vsel %vm285_vm0, %v268_v46, 10000.0 }
  0xee   : > { %v270_v55 = vpop.permute.xlu1 %269 }
  0xef   : > { %vm316_vm1 = vcmp.eq.s32.totalorder %v1930_v53, 1  ;;  %v289_v23 = vsel %vm285_vm0, %v270_v55, 10000.0 }
  0xf0   : > { %v272_v50 = vpop.permute.xlu0 %271 }
  0xf1   : > { %v290_v7 = vsel %vm285_vm0, %v272_v50, 10000.0 }
  0xf2   : > { %v274_v59 = vpop.permute.xlu1 %273 }
  0xf3   : > { %v291_v31 = vsel %vm285_vm0, %v274_v59, 10000.0 }
  0xf4   : > { %v276_v54 = vpop.permute.xlu0 %275 }
  0xf5   : > { %v292_v17 = vsel %vm285_vm0, %v276_v54, 10000.0 }
  0xf6   : > { %v278_v3 = vpop.permute.xlu1 %277 }
  0xf7   : > { %v293_v38 = vsel %vm285_vm0, %v278_v3, 10000.0 }
  0xf8   : > { %v295_v56 = vpop.permute.xlu0 %294 }
  0xf9   : > { %v317_v58 = vsel %vm316_vm1, %v295_v56, 10000.0 }
  0xfa   : > { %v325_v60 = vmin.f32 %v286_v57, %v317_v58  ;;  %v297_v9 = vpop.permute.xlu1 %296 }
  0xfb   : > { %v318_v12 = vsel %vm316_vm1, %v297_v9, 10000.0 }
  0xfc   : > { %v2729_v61 = vmin.f32 %v2662_v18, %v325_v60  ;;  %v299_v62 = vpop.permute.xlu0 %298  ;;  %v326_v14 = vmin.f32 %v287_v10, %v318_v12 }
  0xfd   : > { %v319_v2 = vsel %vm316_vm1, %v299_v62, 10000.0 }
  0xfe   : > { %v327_v4 = vmin.f32 %v288_v63, %v319_v2  ;;  %341 = vrot.lane.b32.xlu0 %v2729_v61, %s2427_s7  ;;  %v2749_v19 = vmin.f32 %v2674_v26, %v326_v14  ;;  %v301_v21 = vpop.permute.xlu1 %300 }
  0xff   : > { %v320_v25 = vsel %vm316_vm1, %v301_v21, 10000.0 }
 0x100   : > { %v2736_v5 = vmin.f32 %v2657_v13, %v327_v4  ;;  %v303_v6 = vpop.permute.xlu0 %302  ;;  %v328_v27 = vmin.f32 %v289_v23, %v320_v25  ;;  %343 = vrot.lane.b32.xlu1 %v2749_v19, %s2427_s7 }
 0x101   : > { %v321_v8 = vsel %vm316_vm1, %v303_v6, 10000.0 }
 0x102   : > { %v329_v11 = vmin.f32 %v290_v7, %v321_v8  ;;  %345 = vrot.lane.b32.xlu0 %v2736_v5, %s2427_s7  ;;  %v2762_v29 = vmin.f32 %v2688_v35, %v328_v27  ;;  %v305_v30 = vpop.permute.xlu1 %304 }
 0x103   : > { %v322_v33 = vsel %vm316_vm1, %v305_v30, 10000.0 }
 0x104   : > { %v2745_v15 = vmin.f32 %v2668_v22, %v329_v11  ;;  %v307_v16 = vpop.permute.xlu0 %306  ;;  %v330_v34 = vmin.f32 %v291_v31, %v322_v33  ;;  %347 = vrot.lane.b32.xlu1 %v2762_v29, %s2427_s7 }
 0x105   : > { %v323_v20 = vsel %vm316_vm1, %v307_v16, 10000.0 }
 0x106   : > { %v331_v24 = vmin.f32 %v292_v17, %v323_v20  ;;  %349 = vrot.lane.b32.xlu0 %v2745_v15, %s2427_s7  ;;  %v2771_v36 = vmin.f32 %v2696_v39, %v330_v34  ;;  %v309_v37 = vpop.permute.xlu1 %308 }
 0x107   : > { %v324_v40 = vsel %vm316_vm1, %v309_v37, 10000.0 }
 0x108   : > { %v2759_v28 = vmin.f32 %v2682_v32, %v331_v24  ;;  %v332_v42 = vmin.f32 %v293_v38, %v324_v40  ;;  %351 = vrot.lane.b32.xlu1 %v2771_v36, %s2427_s7  ;;  %v358_v44 = vpop.permute.xlu0 %357 }
 0x109   : > { %v359_v47 = vsub.s32 %v358_v44, %v2642_v1 }
 0x10a   : > { %353 = vrot.lane.b32.xlu0 %v2759_v28, %s2427_s7  ;;  %v2780_v43 = vmin.f32 %v2702_v41, %v332_v42  ;;  %v389_v46 = vpop.permute.xlu1 %388 }
 0x10b   : > { %v390_v48 = vsub.s32 %v389_v46, %v2642_v1  ;;  %v361_v50 = vsub.s32 0, %v359_v47 }
 0x10c   : > { %355 = vrot.lane.b32.xlu1 %v2780_v43, %s2427_s7 }
 0x10d   : > { %v392_v51 = vsub.s32 0, %v390_v48  ;;  %v1931_v54 = vmin.u32 %v361_v50, %v359_v47  ;;  %v2228_v50 = vld [vmem:[#allocation7 + $0x20] sm:$0xff]  }
 0x10e   : > { %372 = vrot.lane.b32.xlu0 %v2729_v61, %s2428_s21 }
 0x10f   : > { %v1932_v55 = vmin.u32 %v392_v51, %v390_v48  ;;  %vm363_vm2 = vcmp.eq.s32.totalorder %v1931_v54, 2  ;;  %v2226_v48 = vld [vmem:[#allocation7 + $0x10] sm:$0xff]   ;;  %v2229_v51 = vld [vmem:[#allocation7 + $0x28] sm:$0xff]   ;;  %v2877_v54 = vshrl.u32 %v261_v0, 7 }
 0x110   : > { %374 = vrot.lane.b32.xlu1 %v2749_v19, %s2428_s21 }
 0x111   : > { %vm394_vm3 = vcmp.eq.s32.totalorder %v1932_v55, 2  ;;  %v2880_v55 = vadd.s32 8, %v2877_v54  ;;  %vm514_vm4 = vcmp.lt.s32.totalorder %v2877_v54, 7  ;;  %vm595_vm5 = vcmp.lt.s32.totalorder %v2877_v54, 1 }
 0x112   : > { %376 = vrot.lane.b32.xlu0 %v2736_v5, %s2428_s21  ;;  %vm692_vm6 = vcmp.lt.s32.totalorder %v2877_v54, 6  ;;  %vm773_vm7 = vcmp.lt.s32.totalorder %v2877_v54, 2  ;;  %vm3935_vm8 = vcmp.lt.s32.totalorder %v2877_v54, 4 }
 0x114   : > { %378 = vrot.lane.b32.xlu1 %v2762_v29, %s2428_s21 }
 0x116   : > { %380 = vrot.lane.b32.xlu0 %v2745_v15, %s2428_s21 }
 0x118   : > { %382 = vrot.lane.b32.xlu1 %v2771_v36, %s2428_s21 }
 0x11a   : > { %384 = vrot.lane.b32.xlu0 %v2759_v28, %s2428_s21 }
 0x11c   : > { %386 = vrot.lane.b32.xlu1 %v2780_v43, %s2428_s21 }
 0x11e   : > { %435 = vrot.lane.b32.xlu0 %v2642_v1, %s2429_s26 }
 0x120   : > { %466 = vrot.lane.b32.xlu1 %v2642_v1, %s2430_s27 }
 0x170   : > { %v342_v45 = vpop.permute.xlu0 %341 }
 0x171   : > { %v364_v59 = vsel %vm363_vm2, %v342_v45, 10000.0 }
 0x172   : > { %v344_v53 = vpop.permute.xlu1 %343 }
 0x173   : > { %v365_v14 = vsel %vm363_vm2, %v344_v53, 10000.0  ;;  %v2231_v53 = vld [vmem:[#allocation7 + $0x38] sm:$0xff]  }
 0x174   : > { %v346_v49 = vpop.permute.xlu0 %345 }
 0x175   : > { %v366_v4 = vsel %vm363_vm2, %v346_v49, 10000.0  ;;  %v2227_v49 = vld [vmem:[#allocation7 + $0x18] sm:$0xff]  }
 0x176   : > { %v348_v57 = vpop.permute.xlu1 %347 }
 0x177   : > { %v367_v30 = vsel %vm363_vm2, %v348_v57, 10000.0  ;;  %v523_v57 = vrot.slane %v2877_v54, 1 }
 0x178   : > { %v350_v52 = vpop.permute.xlu0 %349 }
 0x179   : > { %v368_v11 = vsel %vm363_vm2, %v350_v52, 10000.0  ;;  %v2230_v52 = vld [vmem:[#allocation7 + $0x30] sm:$0xff]  }
 0x17a   : > { %v352_v62 = vpop.permute.xlu1 %351 }
 0x17b   : > { %v369_v38 = vsel %vm363_vm2, %v352_v62, 10000.0 }
 0x17c   : > { %v354_v56 = vpop.permute.xlu0 %353 }
 0x17d   : > { %v370_v23 = vsel %vm363_vm2, %v354_v56, 10000.0  ;;  %v2883_v56 = vadd.s32 16, %v2877_v54 }
 0x17e   : > { %v356_v7 = vpop.permute.xlu1 %355 }
 0x17f   : > { %v371_v45 = vsel %vm363_vm2, %v356_v7, 10000.0  ;;  %v605_v7 = vrot.slane %v2880_v55, 7 }
 0x180   : > { %v373_v58 = vpop.permute.xlu0 %372 }
 0x181   : > { %v395_v60 = vsel %vm394_vm3, %v373_v58, 10000.0  ;;  %v524_v58 = vrot.slane %v2880_v55, 1 }
 0x182   : > { %v403_v63 = vmin.f32 %v364_v59, %v395_v60  ;;  %v525_v59 = vrot.slane %v2883_v56, 1 }
 0x183   : > { %v537_v0 = vsel %vm514_vm4, %v523_v57, %v524_v58 }
 0x184   : > { %v2807_v2 = vmin.f32 %v2729_v61, %v403_v63  ;;  %v377_v3 = vpop.permute.xlu0 %376  ;;  %v375_v61 = vpop.permute.xlu1 %374  ;;  %v536_v63 = vsel %vm514_vm4, %v524_v58, %v525_v59 }
 0x185   : > { %v397_v6 = vsel %vm394_vm3, %v377_v3, 10000.0  ;;  %v396_v17 = vsel %vm394_vm3, %v375_v61, 10000.0  ;;  %v604_v3 = vrot.slane %v2877_v54, 7 }
 0x186   : > { %v405_v8 = vmin.f32 %v366_v4, %v397_v6  ;;  %419 = vrot.lane.b32.xlu0 %v2807_v2, %s2429_s26  ;;  %v404_v20 = vmin.f32 %v365_v14, %v396_v17  ;;  %v2898_v4 = vadd.s32 24, %v2877_v54  ;;  %v539_v6 = vsub.s32 %v537_v0, %v2877_v54 }
 0x187   : > { %v618_v17 = vsel %vm595_vm5, %v604_v3, %v605_v7 }
 0x188   : > { %v2814_v9 = vmin.f32 %v2736_v5, %v405_v8  ;;  %v381_v10 = vpop.permute.xlu0 %380  ;;  %v2827_v24 = vmin.f32 %v2749_v19, %v404_v20  ;;  %v379_v27 = vpop.permute.xlu1 %378  ;;  %v606_v8 = vrot.slane %v2883_v56, 7  ;;  %v526_v61 = vrot.slane %v2898_v4, 1 }
 0x189   : > { %v399_v12 = vsel %vm394_vm3, %v381_v10, 10000.0  ;;  %v398_v33 = vsel %vm394_vm3, %v379_v27, 10000.0  ;;  %v2904_v10 = vadd.s32 32, %v2877_v54  ;;  %v548_v14 = vsub.s32 0, %v539_v6 }
 0x18a   : > { %v407_v16 = vmin.f32 %v368_v11, %v399_v12  ;;  %423 = vrot.lane.b32.xlu0 %v2814_v9, %s2429_s26  ;;  %v406_v34 = vmin.f32 %v367_v30, %v398_v33  ;;  %421 = vrot.lane.b32.xlu1 %v2827_v24, %s2429_s26  ;;  %v540_v12 = vsub.s32 %v536_v63, %v2880_v55  ;;  %v2922_v27 = vadd.s32 48, %v2877_v54 }
 0x18b   : > { %v527_v20 = vrot.slane %v2904_v10, 1  ;;  %v3888_v30 = vrot.slane %v2883_v56, 2  ;;  %v3887_v33 = vrot.slane %v2880_v55, 6 }
 0x18c   : > { %v2823_v21 = vmin.f32 %v2745_v15, %v407_v16  ;;  %v385_v5 = vpop.permute.xlu0 %384  ;;  %v2840_v19 = vmin.f32 %v2762_v29, %v406_v34  ;;  %v383_v37 = vpop.permute.xlu1 %382  ;;  %v617_v16 = vsel %vm595_vm5, %v605_v7, %v606_v8  ;;  %v3885_v34 = vrot.slane %v2883_v56, 6 }
 0x18d   : > { %v401_v25 = vsel %vm394_vm3, %v385_v5, 10000.0  ;;  %v400_v40 = vsel %vm394_vm3, %v383_v37, 10000.0  ;;  %v607_v5 = vrot.slane %v2898_v4, 7  ;;  %v621_v37 = vsub.s32 %v618_v17, %v2880_v55 }
 0x18e   : > { %v409_v31 = vmin.f32 %v370_v23, %v401_v25  ;;  %427 = vrot.lane.b32.xlu0 %v2823_v21, %s2429_s26  ;;  %v408_v42 = vmin.f32 %v369_v38, %v400_v40  ;;  %425 = vrot.lane.b32.xlu1 %v2840_v19, %s2429_s26  ;;  %v608_v23 = vrot.slane %v2904_v10, 7  ;;  %v2919_v25 = vadd.s32 40, %v2877_v54 }
 0x18f   : > { %v535_v38 = vsel %vm514_vm4, %v525_v59, %v526_v61  ;;  %v632_v58 = vsub.s32 0, %v621_v37 }
 0x190   : > { %v2837_v15 = vmin.f32 %v2759_v28, %v409_v31  ;;  %v2849_v44 = vmin.f32 %v2771_v36, %v408_v42  ;;  %v387_v28 = vpop.permute.xlu1 %386  ;;  %v2224_v36 = vld [vmem:[#allocation7] sm:$0xff]   ;;  %v436_v60 = vpop.permute.xlu0 %435  ;;  %v3886_v31 = vrot.slane %v2898_v4, 2  ;;  %v609_v59 = vrot.slane %v2919_v25, 7 }
 0x191   : > { %v402_v29 = vsel %vm394_vm3, %v387_v28, 10000.0  ;;  %2053 = vmatprep.subr.bf16.mxu0 %v2224_v36  ;;  %v437_v62 = vsub.s32 %v436_v60, %v2642_v1  ;;  %v2935_v28 = vmin.u32 %v548_v14, %v539_v6  ;;  %v610_v60 = vrot.slane %v2922_v27, 7 }
 0x192   : > { %3954 = vst [vmem:[#allocation20_spill] sm:$0xff] %v2837_v15  ;;  %431 = vrot.lane.b32.xlu0 %v2837_v15, %s2429_s26  ;;  %3955 = vst [vmem:[#allocation21_spill] sm:$0xff] %v2849_v44  ;;  %v410_v46 = vmin.f32 %v371_v45, %v402_v29  ;;  %429 = vrot.lane.b32.xlu1 %v2849_v44, %s2429_s26  ;;  %v551_v45 = vsub.s32 0, %v540_v12  ;;  %v534_v29 = vsel %vm514_vm4, %v526_v61, %v527_v20 }
 0x193   : > { %2054 = vmatpush3.bf16.msra.mxu0 %v2224_v36  ;;  %v439_v11 = vsub.s32 0, %v437_v62  ;;  %v616_v36 = vsel %vm595_vm5, %v606_v8, %v607_v5  ;;  %vm571_vm1 = vcmp.eq.s32.totalorder %v2935_v28, 1 }
 0x194   : > { %v2858_v47 = vmin.f32 %v2780_v43, %v410_v46  ;;  %v2225_v43 = vld [vmem:[#allocation7 + $0x8] sm:$0xff]   ;;  %v467_v42 = vpop.permute.xlu1 %466  ;;  %v615_v46 = vsel %vm595_vm5, %v607_v5, %v608_v23  ;;  %v2962_v0 = vmin.u32 %v551_v45, %v540_v12  ;;  %v623_v63 = vsub.s32 %v616_v36, %v2898_v4 }
 0x195   : > { %2055 = vmatprep.subr.bf16.mxu0 %v2225_v43  ;;  %v2933_v40 = vmin.u32 %v439_v11, %v437_v62  ;;  %v542_v62 = vsub.s32 %v534_v29, %v2898_v4  ;;  %v624_v6 = vsub.s32 %v615_v46, %v2904_v10  ;;  %v3890_v12 = vrot.slane %v2904_v10, 2 }
 0x196   : > { %450 = vrot.lane.b32.xlu0 %v2807_v2, %s2430_s27  ;;  %3956 = vst [vmem:[#allocation22_spill] sm:$0xff] %v2858_v47  ;;  %433 = vrot.lane.b32.xlu1 %v2858_v47, %s2429_s26  ;;  %v2975_v5 = vmin.u32 %v632_v58, %v621_v37  ;;  %v3891_v46 = vrot.slane %v2904_v10, 6  ;;  %v638_v36 = vsub.s32 0, %v623_v63  ;;  %v614_v37 = vsel %vm595_vm5, %v608_v23, %v609_v59 }
 0x197   : > { %2056 = vmatpush3.bf16.msra.mxu0 %v2225_v43  ;;  %v528_v43 = vrot.slane %v2919_v25, 1  ;;  %v557_v45 = vsub.s32 0, %v542_v62  ;;  %vm441_vm9 = vcmp.eq.s32.totalorder %v2933_v40, 4  ;;  %vm572_vm11 = vcmp.eq.s32.totalorder %v2962_v0, 1 }
 0x198   : > { %2057 = vmatprep.subr.bf16.mxu0 %v2226_v48  ;;  %vm653_vm12 = vcmp.eq.s32.totalorder %v2975_v5, 1 }
 0x199   : > { %v533_v11 = vsel %vm514_vm4, %v527_v20, %v528_v43  ;;  %v3002_v23 = vmin.u32 %v557_v45, %v542_v62 }
 0x19a   : > { %454 = vrot.lane.b32.xlu0 %v2814_v9, %s2430_s27  ;;  %452 = vrot.lane.b32.xlu1 %v2827_v24, %s2430_s27  ;;  %v543_v29 = vsub.s32 %v533_v11, %v2904_v10 }
 0x19b   : > { %2058 = vmatpush3.bf16.msra.mxu0 %v2226_v48  ;;  %v529_v48 = vrot.slane %v2922_v27, 1  ;;  %vm574_vm15 = vcmp.eq.s32.totalorder %v3002_v23, 1 }
 0x19c   : > { %2059 = vmatprep.subr.bf16.mxu0 %v2227_v49 }
 0x19e   : > { %458 = vrot.lane.b32.xlu0 %v2823_v21, %s2430_s27  ;;  %456 = vrot.lane.b32.xlu1 %v2840_v19, %s2430_s27 }
 0x19f   : > { %2060 = vmatpush3.bf16.msra.mxu0 %v2227_v49  ;;  %v622_v49 = vsub.s32 %v617_v16, %v2883_v56  ;;  %v3889_v16 = vrot.slane %v2919_v25, 2 }
 0x1a0   : > { %2061 = vmatprep.subr.bf16.mxu0 %v2228_v50 }
 0x1a1   : > { %v635_v61 = vsub.s32 0, %v622_v49  ;;  %v711_v11 = vsel %vm692_vm6, %v3890_v12, %v3889_v16  ;;  %v3010_v12 = vmin.u32 %v638_v36, %v623_v63  ;;  %v3892_v63 = vrot.slane %v2922_v27, 2 }
 0x1a2   : > { %462 = vrot.lane.b32.xlu0 %v2837_v15, %s2430_s27  ;;  %460 = vrot.lane.b32.xlu1 %v2849_v44, %s2430_s27 }
 0x1a3   : > { %2062 = vmatpush3.bf16.msra.mxu0 %v2228_v50  ;;  %v541_v50 = vsub.s32 %v535_v38, %v2883_v56  ;;  %v613_v38 = vsel %vm595_vm5, %v609_v59, %v610_v60  ;;  %v560_v59 = vsub.s32 0, %v543_v29  ;;  %vm655_vm0 = vcmp.eq.s32.totalorder %v3010_v12, 1 }
 0x1a4   : > { %2063 = vmatprep.subr.bf16.mxu0 %v2229_v51  ;;  %v626_v58 = vsub.s32 %v613_v38, %v2922_v27 }
 0x1a5   : > { %v554_v14 = vsub.s32 0, %v541_v50  ;;  %v3026_v36 = vmin.u32 %v560_v59, %v543_v29 }
 0x1a6   : > { %464 = vrot.lane.b32.xlu1 %v2858_v47, %s2430_s27 }
 0x1a7   : > { %2064 = vmatpush3.bf16.msra.mxu0 %v2229_v51  ;;  %v713_v51 = vsel %vm692_vm6, %v3888_v30, %v3886_v31  ;;  %v2997_v31 = vmin.u32 %v635_v61, %v622_v49  ;;  %v625_v49 = vsub.s32 %v614_v37, %v2919_v25  ;;  %vm575_vm3 = vcmp.eq.s32.totalorder %v3026_v36, 1 }
 0x1a8   : > { %2065 = vmatprep.subr.bf16.mxu0 %v2230_v52  ;;  %v719_v7 = vsub.s32 %v713_v51, %v2883_v56 }
 0x1a9   : > { %vm654_vm13 = vcmp.eq.s32.totalorder %v2997_v31, 1 }
 0x1aa   : > { %v732_v51 = vsub.s32 0, %v719_v7 }
 0x1ab   : > { %2066 = vmatpush3.bf16.msra.mxu0 %v2230_v52  ;;  %v795_v52 = vsel %vm773_vm7, %v3887_v33, %v3885_v34  ;;  %v2999_v33 = vmin.u32 %v554_v14, %v541_v50  ;;  %v721_v50 = vsub.s32 %v711_v11, %v2904_v10  ;;  %v647_v14 = vsub.s32 0, %v626_v58 }
 0x1ac   : > { %2067 = vmatprep.subr.bf16.mxu0 %v2231_v53  ;;  %v800_v8 = vsub.s32 %v795_v52, %v2883_v56  ;;  %v3016_v61 = vmin.u32 %v732_v51, %v719_v7  ;;  %v701_v7 = vrot.slane %v2877_v54, 2  ;;  %v644_v51 = vsub.s32 0, %v625_v49 }
 0x1ad   : > { %v3898_v11 = vrot.slane %v2919_v25, 6  ;;  %v3045_v59 = vmin.u32 %v647_v14, %v626_v58  ;;  %v782_v58 = vrot.slane %v2877_v54, 6  ;;  %vm573_vm14 = vcmp.eq.s32.totalorder %v2999_v33, 1 }
 0x1ae   : > { %v813_v52 = vsub.s32 0, %v800_v8  ;;  %3957 = vst [vmem:[#allocation23_spill] sm:$0xff] %v3016_v61 }
 0x1af   : > { %2068 = vmatpush3.bf16.msra.mxu0 %v2231_v53  ;;  %v468_v53 = vsub.s32 %v467_v42, %v2642_v1  ;;  %v532_v1 = vsel %vm514_vm4, %v528_v43, %v529_v48  ;;  %v2980_v42 = vadd.s32 56, %v2877_v54  ;;  %v641_v43 = vsub.s32 0, %v624_v6  ;;  %3960 = vst [vmem:[#allocation26_spill] sm:$0xff] %v3045_v59 }
 0x1b0   : > { %v544_v20 = vsub.s32 %v532_v1, %v2919_v25  ;;  %v3893_v1 = vrot.slane %v2898_v4, 6  ;;  %v3018_v62 = vmin.u32 %v813_v52, %v800_v8  ;;  %v788_v8 = vrot.slane %v2922_v27, 6 }
 0x1b1   : > { %v470_v17 = vsub.s32 0, %v468_v53  ;;  %v530_v30 = vrot.slane %v2980_v42, 1  ;;  %v738_v52 = vsub.s32 0, %v721_v50 }
 0x1b2   : > { %v563_v38 = vsub.s32 0, %v544_v20  ;;  %v793_v16 = vsel %vm773_vm7, %v3893_v1, %v3891_v46  ;;  %3958 = vst [vmem:[#allocation24_spill] sm:$0xff] %v3018_v62  ;;  %v3066_v1 = vmin.u32 %v644_v51, %v625_v49  ;;  %v3965_v51 = vrot.slane %v2880_v55, 6 }
 0x1b3   : > { %v2995_v34 = vmin.u32 %v470_v17, %v468_v53  ;;  %v3012_v53 = vmin.u32 %v641_v43, %v624_v6  ;;  %v611_v17 = vrot.slane %v2980_v42, 7  ;;  %v802_v45 = vsub.s32 %v793_v16, %v2904_v10 }
 0x1b4   : > { %v531_v46 = vsel %vm514_vm4, %v529_v48, %v530_v30  ;;  %v708_v6 = vrot.slane %v2980_v42, 2  ;;  %v3028_v43 = vmin.u32 %v563_v38, %v544_v20  ;;  %v538_v16 = vsel %vm514_vm4, %v530_v30, %v523_v57  ;;  %3961 = vst [vmem:[#allocation27_spill] sm:$0xff] %v3066_v1 }
 0x1b5   : > { %v789_v48 = vrot.slane %v2980_v42, 6  ;;  %v545_v37 = vsub.s32 %v531_v46, %v2922_v27  ;;  %v612_v29 = vsel %vm595_vm5, %v610_v60, %v611_v17  ;;  %v619_v20 = vsel %vm595_vm5, %v611_v17, %v604_v3 }
 0x1b6   : > { %3959 = vst [vmem:[#allocation25_spill] sm:$0xff] %v3028_v43  ;;  %v819_v38 = vsub.s32 0, %v802_v45  ;;  %v709_v57 = vsel %vm692_vm6, %v3892_v63, %v708_v6  ;;  %v702_v30 = vrot.slane %v2880_v55, 2  ;;  %v546_v46 = vsub.s32 %v538_v16, %v2980_v42 }
 0x1b7   : > { %v716_v60 = vsel %vm692_vm6, %v708_v6, %v701_v7  ;;  %v791_v3 = vsel %vm773_vm7, %v3898_v11, %v788_v8  ;;  %v620_v14 = vsub.s32 %v619_v20, %v2877_v54  ;;  %v627_v17 = vsub.s32 %v612_v29, %v2980_v42 }
 0x1b8   : > { %v790_v63 = vsel %vm773_vm7, %v788_v8, %v789_v48  ;;  %v715_v16 = vsel %vm692_vm6, %v701_v7, %v702_v30  ;;  %v3068_v6 = vmin.u32 %v738_v52, %v721_v50  ;;  %v566_v41 = vsub.s32 0, %v545_v37 }
 0x1b9   : > { %v723_v32 = vsub.s32 %v709_v57, %v2922_v27  ;;  %v3071_v11 = vmin.u32 %v819_v38, %v802_v45  ;;  %v724_v39 = vsub.s32 %v716_v60, %v2980_v42  ;;  %v804_v20 = vsub.s32 %v791_v3, %v2922_v27 }
 0x1ba   : > { %3962 = vst [vmem:[#allocation28_spill] sm:$0xff] %v3068_v6  ;;  %v3964_v29 = vrot.slane %v2883_v56, 2  ;;  %v569_v49 = vsub.s32 0, %v546_v46  ;;  %v805_v50 = vsub.s32 %v790_v63, %v2980_v42  ;;  %v717_v7 = vsub.s32 %v715_v16, %v2877_v54 }
 0x1bb   : > { %3963 = vst [vmem:[#allocation29_spill] sm:$0xff] %v3071_v11  ;;  %v796_v45 = vsel %vm773_vm7, %v782_v58, %v3965_v51  ;;  %v629_v52 = vsub.s32 0, %v620_v14  ;;  %v650_v38 = vsub.s32 0, %v627_v17  ;;  %v879_v57 = vrot.slane %v2877_v54, 4 }
 0x1bc   : > { %v714_v8 = vsel %vm692_vm6, %v702_v30, %v3964_v29  ;;  %v880_v60 = vrot.slane %v2880_v55, 4  ;;  %v3089_v3 = vmin.u32 %v566_v41, %v545_v37  ;;  %v744_v30 = vsub.s32 0, %v723_v32 }
 0x1bd   : > { %v718_v29 = vsub.s32 %v714_v8, %v2880_v55  ;;  %v747_v35 = vsub.s32 0, %v724_v39  ;;  %v825_v16 = vsub.s32 0, %v804_v20  ;;  %v797_v13 = vsel %vm773_vm7, %v789_v48, %v782_v58 }
 0x1be   : > { %3966 = vst [vmem:[#allocation30_spill] sm:$0xff] %v3089_v3  ;;  %v799_v51 = vsub.s32 %v796_v45, %v2880_v55  ;;  %v828_v18 = vsub.s32 0, %v805_v50  ;;  %v726_v6 = vsub.s32 0, %v717_v7  ;;  %v881_v41 = vrot.slane %v2883_v56, 4 }
 0x1bf   : > { %v3100_v37 = vmin.u32 %v569_v49, %v546_v46  ;;  %v3102_v8 = vmin.u32 %v629_v52, %v620_v14  ;;  %v3104_v63 = vmin.u32 %v650_v38, %v627_v17  ;;  %v893_v47 = vsel %vm3935_vm8, %v879_v57, %v880_v60 }
 0x1c0   : > { %v729_v48 = vsub.s32 0, %v718_v29  ;;  %v798_v58 = vsub.s32 %v797_v13, %v2877_v54  ;;  %v892_v45 = vsel %vm3935_vm8, %v880_v60, %v881_v41  ;;  %v3970_v11 = vrot.slane %v2980_v42, 4 }
 0x1c1   : > { %3967 = vst [vmem:[#allocation31_spill] sm:$0xff] %v3100_v37  ;;  %3968 = vst [vmem:[#allocation32_spill] sm:$0xff] %v3102_v8  ;;  %v3115_v46 = vmin.u32 %v744_v30, %v723_v32  ;;  %v3117_v14 = vmin.u32 %v747_v35, %v724_v39  ;;  %v3119_v17 = vmin.u32 %v825_v16, %v804_v20  ;;  %v810_v49 = vsub.s32 0, %v799_v51 }
 0x1c2   : > { %3969 = vst [vmem:[#allocation33_spill] sm:$0xff] %v3104_v63  ;;  %v894_v3 = vsel %vm3935_vm8, %v3970_v11, %v879_v57  ;;  %v3123_v38 = vmin.u32 %v828_v18, %v805_v50  ;;  %v3125_v13 = vmin.u32 %v726_v6, %v717_v7  ;;  %v895_v60 = vsub.s32 %v893_v47, %v2877_v54  ;;  %v3998_v12 = vld [vmem:[#allocation29_spill] sm:$0xff] }
 0x1c3   : > { %3971 = vst [vmem:[#allocation34_spill] sm:$0xff] %v3115_v46  ;;  %3972 = vst [vmem:[#allocation35_spill] sm:$0xff] %v3117_v14  ;;  %v3976_v63 = vrot.slane %v2904_v10, 2  ;;  %v3977_v8 = vrot.slane %v2898_v4, 2  ;;  %v896_v39 = vsub.s32 %v892_v45, %v2880_v55  ;;  %v902_v11 = vsub.s32 %v894_v3, %v2980_v42 }
 0x1c4   : > { %3973 = vst [vmem:[#allocation36_spill] sm:$0xff] %v3119_v17  ;;  %3974 = vst [vmem:[#allocation37_spill] sm:$0xff] %v3123_v38  ;;  %v943_v18 = vsub.s32 %v894_v3, %v2877_v54  ;;  %v882_v6 = vrot.slane %v2898_v4, 4  ;;  %vm472_vm10 = vcmp.eq.s32.totalorder %v2995_v34, 4  ;;  %v3142_v20 = vmin.u32 %v729_v48, %v718_v29  ;;  %v3996_v34 = vld [vmem:[#allocation21_spill] sm:$0xff] }
 0x1c5   : > { %3975 = vst [vmem:[#allocation38_spill] sm:$0xff] %v3125_v13  ;;  %v712_v32 = vsel %vm692_vm6, %v3977_v8, %v3976_v63  ;;  %v807_v50 = vsub.s32 0, %v798_v58  ;;  %v944_v7 = vsub.s32 %v893_v47, %v2880_v55  ;;  %v945_v57 = vsub.s32 %v892_v45, %v2883_v56 }
 0x1c6   : > { %3978 = vst [vmem:[#allocation39_spill] sm:$0xff] %v3142_v20  ;;  %v3146_v30 = vmin.u32 %v810_v49, %v799_v51  ;;  %v720_v63 = vsub.s32 %v712_v32, %v2898_v4  ;;  %v3980_v16 = vrot.slane %v2898_v4, 6  ;;  %v3981_v3 = vrot.slane %v2883_v56, 6 }
 0x1c7   : > { %v883_v13 = vrot.slane %v2904_v10, 4  ;;  %v904_v48 = vsub.s32 0, %v895_v60  ;;  %v3982_v47 = vrot.slane %v2922_v27, 2  ;;  %v3983_v55 = vrot.slane %v2919_v25, 2 }
 0x1c8   : > { %3979 = vst [vmem:[#allocation40_spill] sm:$0xff] %v3146_v30  ;;  %v794_v8 = vsel %vm773_vm7, %v3981_v3, %v3980_v16  ;;  %v3984_v45 = vrot.slane %v2919_v25, 6  ;;  %v3985_v49 = vrot.slane %v2904_v10, 6  ;;  %v884_v16 = vrot.slane %v2919_v25, 4  ;;  %v4000_v28 = vld [vmem:[#allocation32_spill] sm:$0xff] }
 0x1c9   : > { %v710_v51 = vsel %vm692_vm6, %v3983_v55, %v3982_v47  ;;  %v907_v30 = vsub.s32 0, %v896_v39  ;;  %v925_v38 = vsub.s32 0, %v902_v11  ;;  %v952_v14 = vsub.s32 0, %v943_v18 }
 0x1ca   : > { %v792_v32 = vsel %vm773_vm7, %v3985_v49, %v3984_v45  ;;  %v891_v46 = vsel %vm3935_vm8, %v881_v41, %v882_v6  ;;  %v3175_v17 = vmin.u32 %v807_v50, %v798_v58  ;;  %v955_v47 = vsub.s32 0, %v944_v7 }
 0x1cb   : > { %v958_v55 = vsub.s32 0, %v945_v57  ;;  %v801_v20 = vsub.s32 %v794_v8, %v2898_v4  ;;  %v735_v37 = vsub.s32 0, %v720_v63  ;;  %v890_v45 = vsel %vm3935_vm8, %v882_v6, %v883_v13 }
 0x1cc   : > { %3986 = vst [vmem:[#allocation41_spill] sm:$0xff] %v3175_v17  ;;  %v722_v49 = vsub.s32 %v710_v51, %v2919_v25  ;;  %v803_v44 = vsub.s32 %v792_v32, %v2919_v25  ;;  %v897_v61 = vsub.s32 %v891_v46, %v2883_v56  ;;  %v946_v15 = vsub.s32 %v891_v46, %v2898_v4 }
 0x1cd   : > { %v885_v41 = vrot.slane %v2922_v27, 4  ;;  %v889_v58 = vsel %vm3935_vm8, %v883_v13, %v884_v16  ;;  %v3189_v8 = vmin.u32 %v904_v48, %v895_v60  ;;  %v3191_v17 = vmin.u32 %v907_v30, %v896_v39 }
 0x1ce   : > { %v3193_v6 = vmin.u32 %v925_v38, %v902_v11  ;;  %v3195_v51 = vmin.u32 %v952_v14, %v943_v18  ;;  %v3197_v32 = vmin.u32 %v955_v47, %v944_v7  ;;  %v3199_v56 = vmin.u32 %v958_v55, %v945_v57 }
 0x1cf   : > { %v816_v46 = vsub.s32 0, %v801_v20  ;;  %v898_v1 = vsub.s32 %v890_v45, %v2898_v4  ;;  %v741_v62 = vsub.s32 0, %v722_v49  ;;  %v822_v43 = vsub.s32 0, %v803_v44 }
 0x1d0   : > { %3987 = vst [vmem:[#allocation42_spill] sm:$0xff] %v3197_v32  ;;  %3988 = vst [vmem:[#allocation43_spill] sm:$0xff] %v3199_v56  ;;  %v899_v60 = vsub.s32 %v889_v58, %v2904_v10  ;;  %v3205_v30 = vmin.u32 %v735_v37, %v720_v63  ;;  %v910_v38 = vsub.s32 0, %v897_v61  ;;  %v961_v14 = vsub.s32 0, %v946_v15 }
 0x1d1   : > { %v888_v11 = vsel %vm3935_vm8, %v884_v16, %v885_v41  ;;  %v3989_v37 = vrot.slane %v2980_v42, 4  ;;  %v3223_v16 = vmin.u32 %v816_v46, %v801_v20  ;;  %v913_v47 = vsub.s32 0, %v898_v1 }
 0x1d2   : > { %v900_v55 = vsub.s32 %v888_v11, %v2919_v25  ;;  %v3232_v32 = vmin.u32 %v910_v38, %v897_v61  ;;  %v948_v20 = vsub.s32 %v889_v58, %v2919_v25  ;;  %vm656_vm2 = vcmp.eq.s32.totalorder %v3012_v53, 1 }
 0x1d3   : > { %v887_v57 = vsel %vm3935_vm8, %v885_v41, %v3989_v37  ;;  %v947_v41 = vsub.s32 %v890_v45, %v2904_v10  ;;  %v3254_v58 = vmin.u32 %v913_v47, %v898_v1 }
 0x1d4   : > { %v901_v46 = vsub.s32 %v887_v57, %v2922_v27  ;;  %v967_v38 = vsub.s32 0, %v948_v20 }
 0x1f8   : > { %v3079_v22 = vpop.permute.xlu0 %419 }
 0x1f9   : > { %v442_v18 = vsel %vm441_vm9, %v3079_v22, 10000.0  ;;  %v3227_v22 = vmin.u32 %v741_v62, %v722_v49  ;;  %v3240_v49 = vmin.u32 %v961_v14, %v946_v15  ;;  %v922_v14 = vsub.s32 0, %v901_v46 }
 0x1fc   : > { %v3096_v26 = vpop.permute.xlu0 %423  ;;  %v3134_v35 = vpop.permute.xlu1 %421 }
 0x1fd   : > { %v444_v4 = vsel %vm441_vm9, %v3096_v26, 10000.0  ;;  %v3229_v26 = vmin.u32 %v822_v43, %v803_v44  ;;  %v949_v44 = vsub.s32 %v888_v11, %v2922_v27  ;;  %v950_v43 = vsub.s32 %v887_v57, %v2980_v42 }
 0x1fe   : > { %v919_v27 = vsub.s32 0, %v900_v55  ;;  %v964_v42 = vsub.s32 0, %v947_v41 }
 0x200   : > { %v3121_v52 = vpop.permute.xlu0 %427  ;;  %v3171_v3 = vpop.permute.xlu1 %425  ;;  %v3276_v47 = vmin.u32 %v919_v27, %v900_v55 }
 0x204   : > { %v3156_v29 = vpop.permute.xlu0 %431  ;;  %v3187_v50 = vpop.permute.xlu1 %429 }
 0x208   : > { %v451_v59 = vpop.permute.xlu0 %450  ;;  %v3217_v7 = vpop.permute.xlu1 %433 }
 0x209   : > { %v473_v13 = vsel %vm472_vm10, %v451_v59, 10000.0 }
 0x20a   : > { %v481_v63 = vmin.f32 %v442_v18, %v473_v13  ;;  %v443_v13 = vsel %vm441_vm9, %v3134_v35, 10000.0  ;;  %v973_v18 = vsub.s32 0, %v950_v43 }
 0x20c   : > { %v455_v39 = vpop.permute.xlu0 %454  ;;  %v453_v62 = vpop.permute.xlu1 %452  ;;  %v3245_v61 = vmin.f32 %v2807_v2, %v481_v63  ;;  %v446_v2 = vsel %vm441_vm9, %v3121_v52, 10000.0  ;;  %v445_v52 = vsel %vm441_vm9, %v3171_v3, 10000.0  ;;  %v3278_v3 = vmin.u32 %v964_v42, %v947_v41 }
 0x20d   : > { %v475_v59 = vsel %vm472_vm10, %v455_v39, 10000.0  ;;  %v916_v39 = vsub.s32 0, %v899_v60  ;;  %v474_v45 = vsel %vm472_vm10, %v453_v62, 10000.0  ;;  %v448_v62 = vsel %vm441_vm9, %v3156_v29, 10000.0 }
 0x20e   : > { %v483_v48 = vmin.f32 %v444_v4, %v475_v59  ;;  %v482_v35 = vmin.f32 %v443_v13, %v474_v45  ;;  %v587_v4 = vrot.slane %v3245_v61, 7  ;;  %v3282_v13 = vmin.u32 %v922_v14, %v901_v46 }
 0x20f   : > { %v3256_v15 = vmin.u32 %v916_v39, %v899_v60  ;;  %v970_v60 = vsub.s32 0, %v949_v44  ;;  %v3280_v39 = vmin.u32 %v967_v38, %v948_v20  ;;  %v3310_v42 = vmin.u32 %v973_v18, %v950_v43 }
 0x210   : > { %v459_v56 = vpop.permute.xlu0 %458  ;;  %v3248_v10 = vmin.f32 %v2814_v9, %v483_v48  ;;  %v490_v11 = vmin.f32 %v2827_v24, %v482_v35  ;;  %v457_v1 = vpop.permute.xlu1 %456  ;;  %v447_v35 = vsel %vm441_vm9, %v3187_v50, 10000.0  ;;  %v506_v0 = vrot.slane %v3245_v61, 1 }
 0x211   : > { %v477_v25 = vsel %vm472_vm10, %v459_v56, 10000.0  ;;  %v476_v24 = vsel %vm472_vm10, %v457_v1, 10000.0 }
 0x212   : > { %v485_v56 = vmin.f32 %v446_v2, %v477_v25  ;;  %v508_v59 = vrot.slane %v3248_v10, 1  ;;  %v507_v37 = vrot.slane %v490_v11, 1  ;;  %v588_v57 = vrot.slane %v490_v11, 7  ;;  %v3990_v2 = vld [vmem:[#allocation25_spill] sm:$0xff] }
 0x213   : > { %v484_v48 = vmin.f32 %v445_v52, %v476_v24  ;;  %v589_v20 = vrot.slane %v3248_v10, 7  ;;  %vm576_vm8 = vcmp.eq.s32.totalorder %v3990_v2, 1  ;;  %v3992_v52 = vld [vmem:[#allocation27_spill] sm:$0xff] }
 0x214   : > { %v463_v9 = vpop.permute.xlu0 %462  ;;  %v3288_v25 = vmin.f32 %v2823_v21, %v485_v56  ;;  %v520_v45 = vsel %vm514_vm4, %v507_v37, %v508_v59  ;;  %v602_v55 = vsel %vm595_vm5, %v587_v4, %v588_v57  ;;  %v461_v41 = vpop.permute.xlu1 %460  ;;  %v521_v24 = vsel %vm514_vm4, %v506_v0, %v507_v37 }
 0x215   : > { %v479_v63 = vsel %vm472_vm10, %v463_v9, 10000.0  ;;  %v580_v46 = vsel %vm572_vm11, %v520_v45, 10000.0  ;;  %v661_v21 = vsel %vm653_vm12, %v602_v55, 10000.0  ;;  %v492_v27 = vmin.f32 %v2840_v19, %v484_v48  ;;  %v3991_v19 = vld [vmem:[#allocation24_spill] sm:$0xff]  ;;  %v3994_v48 = vld [vmem:[#allocation23_spill] sm:$0xff] }
 0x216   : > { %v487_v29 = vmin.f32 %v448_v62, %v479_v63  ;;  %v3308_v9 = vmin.u32 %v970_v60, %v949_v44  ;;  %v601_v5 = vsel %vm595_vm5, %v588_v57, %v589_v20  ;;  %v669_v38 = vmin.f32 %v580_v46, %v661_v21  ;;  %v3993_v57 = vld [vmem:[#allocation20_spill] sm:$0xff] }
 0x217   : > { %v478_v14 = vsel %vm472_vm10, %v461_v41, 10000.0  ;;  %v510_v50 = vrot.slane %v3288_v25, 1  ;;  %v509_v56 = vrot.slane %v492_v27, 1  ;;  %v590_v1 = vrot.slane %v492_v27, 7 }
 0x218   : > { %vm657_vm12 = vcmp.eq.s32.totalorder %v3992_v52, 1  ;;  %v486_v44 = vmin.f32 %v447_v35, %v478_v14  ;;  %v465_v43 = vpop.permute.xlu1 %464  ;;  %v449_v60 = vsel %vm441_vm9, %v3217_v7, 10000.0  ;;  %v591_v18 = vrot.slane %v3288_v25, 7  ;;  %v3995_v7 = vld [vmem:[#allocation26_spill] sm:$0xff] }
 0x219   : > { %v3329_v63 = vmin.f32 %v3993_v57, %v487_v29  ;;  %vm751_vm11 = vcmp.eq.s32.totalorder %v3994_v48, 2  ;;  %v662_v62 = vsel %vm654_vm13, %v601_v5, 10000.0  ;;  %v518_v45 = vsel %vm514_vm4, %v509_v56, %v510_v50  ;;  %v3997_v5 = vld [vmem:[#allocation30_spill] sm:$0xff]  ;;  %v4006_v48 = vld [vmem:[#allocation36_spill] sm:$0xff] }
 0x21a   : > { %v519_v40 = vsel %vm514_vm4, %v508_v59, %v509_v56  ;;  %vm658_vm9 = vcmp.eq.s32.totalorder %v3995_v7, 1  ;;  %v480_v55 = vsel %vm472_vm10, %v465_v43, 10000.0  ;;  %v3341_v37 = vmin.f32 %v490_v11, %v669_v38  ;;  %v4001_v43 = vld [vmem:[#allocation33_spill] sm:$0xff] }
 0x21b   : > { %v581_v41 = vsel %vm573_vm14, %v519_v40, 10000.0  ;;  %v582_v31 = vsel %vm574_vm15, %v518_v45, 10000.0  ;;  %v600_v46 = vsel %vm595_vm5, %v589_v20, %v590_v1  ;;  %v599_v21 = vsel %vm595_vm5, %v590_v1, %v591_v18  ;;  %v4009_v7 = vld [vmem:[#allocation37_spill] sm:$0xff] }
 0x21c   : > { %v663_v59 = vsel %vm655_vm0, %v600_v46, 10000.0  ;;  %v670_v29 = vmin.f32 %v581_v41, %v662_v62  ;;  %v494_v35 = vmin.f32 %v3996_v34, %v486_v44  ;;  %v3356_v11 = vsel %vm571_vm1, %v521_v24, 10000.0  ;;  %v3999_v44 = vld [vmem:[#allocation31_spill] sm:$0xff]  ;;  %v4002_v62 = vld [vmem:[#allocation22_spill] sm:$0xff] }
 0x21d   : > { %v512_v33 = vrot.slane %v3329_v63, 1  ;;  %v671_v23 = vmin.f32 %v582_v31, %v663_v59  ;;  %vm577_vm10 = vcmp.eq.s32.totalorder %v3997_v5, 1  ;;  %v488_v38 = vmin.f32 %v449_v60, %v480_v55  ;;  %v4003_v55 = vld [vmem:[#allocation28_spill] sm:$0xff]  ;;  %v4004_v46 = vld [vmem:[#allocation39_spill] sm:$0xff] }
 0x21e   : > { %v593_v20 = vrot.slane %v3329_v63, 7  ;;  %v3362_v14 = vmin.f32 %v3248_v10, %v670_v29  ;;  %vm834_vm13 = vcmp.eq.s32.totalorder %v3998_v12, 2  ;;  %v511_v56 = vrot.slane %v494_v35, 1 }
 0x21f   : > { %v592_v1 = vrot.slane %v494_v35, 7  ;;  %vm578_vm14 = vcmp.eq.s32.totalorder %v3999_v44, 1  ;;  %vm652_vm15 = vcmp.eq.s32.totalorder %v4000_v28, 1  ;;  %v766_v24 = vrot.slane %v3341_v37, 6 }
 0x220   : > { %v664_v60 = vsel %vm656_vm2, %v599_v21, 10000.0  ;;  %v3371_v57 = vmin.f32 %v492_v27, %v671_v23  ;;  %v3374_v10 = vmin.f32 %v4002_v62, %v488_v38  ;;  %v686_v45 = vrot.slane %v3362_v14, 2 }
 0x221   : > { %v767_v40 = vrot.slane %v3362_v14, 6  ;;  %vm753_vm1 = vcmp.eq.s32.totalorder %v4003_v55, 2  ;;  %v516_v41 = vsel %vm514_vm4, %v511_v56, %v512_v33  ;;  %v517_v31 = vsel %vm514_vm4, %v510_v50, %v511_v56 }
 0x222   : > { %v687_v53 = vrot.slane %v3371_v57, 2  ;;  %v768_v27 = vrot.slane %v3371_v57, 6  ;;  %v583_v21 = vsel %vm575_vm3, %v517_v31, 10000.0  ;;  %v584_v59 = vsel %vm576_vm8, %v516_v41, 10000.0 }
 0x223   : > { %vm752_vm2 = vcmp.eq.s32.totalorder %v3205_v30, 2  ;;  %v779_v29 = vsel %vm773_vm7, %v766_v24, %v767_v40  ;;  %v597_v50 = vsel %vm595_vm5, %v592_v1, %v593_v20  ;;  %v598_v34 = vsel %vm595_vm5, %v591_v18, %v592_v1 }
 0x224   : > { %v672_v23 = vmin.f32 %v583_v21, %v664_v60  ;;  %vm833_vm0 = vcmp.eq.s32.totalorder %v3223_v16, 2  ;;  %vm835_vm3 = vcmp.eq.s32.totalorder %v3229_v26, 2  ;;  %v685_v36 = vrot.slane %v3341_v37, 2 }
 0x225   : > { %v697_v2 = vsel %vm692_vm6, %v686_v45, %v687_v53  ;;  %vm4005_vm8 = vcmp.eq.s32.totalorder %v3991_v19, 2  ;;  %v665_v56 = vsel %vm657_vm12, %v598_v34, 10000.0  ;;  %v778_v18 = vsel %vm773_vm7, %v767_v40, %v768_v27 }
 0x226   : > { %v840_v38 = vsel %vm4005_vm8, %v779_v29, 10000.0  ;;  %v759_v62 = vsel %vm751_vm11, %v697_v2, 10000.0  ;;  %v673_v1 = vmin.f32 %v584_v59, %v665_v56  ;;  %v680_v60 = vmin.f32 %v3288_v25, %v672_v23  ;;  %v4007_v25 = vld [vmem:[#allocation34_spill] sm:$0xff]  ;;  %v4008_v59 = vld [vmem:[#allocation35_spill] sm:$0xff] }
 0x227   : > { %v848_v41 = vmin.f32 %v759_v62, %v840_v38  ;;  %v666_v31 = vsel %vm658_vm9, %v597_v50, 10000.0  ;;  %v513_v21 = vrot.slane %v3374_v10, 1  ;;  %v594_v19 = vrot.slane %v3374_v10, 7  ;;  %v4010_v2 = vld [vmem:[#allocation38_spill] sm:$0xff] }
 0x228   : > { %v3417_v29 = vmin.f32 %v494_v35, %v673_v1  ;;  %v688_v52 = vrot.slane %v680_v60, 2  ;;  %v769_v34 = vrot.slane %v680_v60, 6  ;;  %vm836_vm11 = vcmp.eq.s32.totalorder %v4006_v48, 2 }
 0x229   : > { %v698_v40 = vsel %vm692_vm6, %v685_v36, %v686_v45  ;;  %vm755_vm12 = vcmp.eq.s32.totalorder %v4007_v25, 2  ;;  %v515_v50 = vsel %vm514_vm4, %v512_v33, %v513_v21  ;;  %v522_v35 = vsel %vm514_vm4, %v513_v21, %v506_v0  ;;  %v4012_v21 = vld [vmem:[#allocation41_spill] sm:$0xff] }
 0x22a   : > { %v596_v23 = vsel %vm595_vm5, %v593_v20, %v594_v19  ;;  %v603_v45 = vsel %vm595_vm5, %v594_v19, %v587_v4  ;;  %v689_v38 = vrot.slane %v3417_v29, 2  ;;  %v770_v56 = vrot.slane %v3417_v29, 6  ;;  %v4013_v19 = vld [vmem:[#allocation40_spill] sm:$0xff] }
 0x22b   : > { %v777_v33 = vsel %vm773_vm7, %v768_v27, %v769_v34  ;;  %v585_v0 = vsel %vm577_vm10, %v515_v50, 10000.0  ;;  %v586_v62 = vsel %vm578_vm14, %v522_v35, 10000.0  ;;  %v660_v4 = vsel %vm652_vm15, %v603_v45, 10000.0 }
 0x22c   : > { %v842_v20 = vsel %vm834_vm13, %v777_v33, 10000.0  ;;  %vm4011_vm4 = vcmp.eq.s32.totalorder %v4001_v43, 1  ;;  %vm830_vm5 = vcmp.eq.s32.totalorder %v4012_v21, 2  ;;  %vm831_vm8 = vcmp.eq.s32.totalorder %v4013_v19, 2 }
 0x22d   : > { %v667_v1 = vsel %vm4011_vm4, %v596_v23, 10000.0  ;;  %vm754_vm9 = vcmp.eq.s32.totalorder %v3227_v22, 2  ;;  %v695_v5 = vsel %vm692_vm6, %v688_v52, %v689_v38  ;;  %v776_v12 = vsel %vm773_vm7, %v769_v34, %v770_v56 }
 0x22e   : > { %v668_v44 = vmin.f32 %v3356_v11, %v660_v4  ;;  %v674_v27 = vmin.f32 %v585_v0, %v666_v31  ;;  %v761_v28 = vsel %vm753_vm1, %v695_v5, 10000.0  ;;  %v675_v43 = vmin.f32 %v586_v62, %v667_v1  ;;  %v4018_v4 = vld [vmem:[#allocation42_spill] sm:$0xff]  ;;  %v4019_v1 = vld [vmem:[#allocation43_spill] sm:$0xff] }
 0x22f   : > { %vm4014_vm10 = vcmp.eq.s32.totalorder %v4004_v46, 2  ;;  %v696_v35 = vsel %vm692_vm6, %v687_v53, %v688_v52  ;;  %v850_v23 = vmin.f32 %v761_v28, %v842_v20  ;;  %v3476_v55 = vmin.f32 %v3362_v14, %v848_v41 }
 0x230   : > { %v3466_v50 = vsel %vm4014_vm10, %v698_v40, 10000.0  ;;  %v676_v45 = vmin.f32 %v3245_v61, %v668_v44  ;;  %v682_v33 = vmin.f32 %v3329_v63, %v674_v27  ;;  %v760_v11 = vsel %vm752_vm2, %v696_v35, 10000.0 }
 0x231   : > { %v683_v31 = vmin.f32 %v3374_v10, %v675_v43  ;;  %v841_v46 = vsel %vm833_vm0, %v778_v18, 10000.0  ;;  %v843_v34 = vsel %vm835_vm3, %v776_v12, 10000.0  ;;  %v3482_v53 = vmin.f32 %v680_v60, %v850_v23 }
 0x232   : > { %v684_v52 = vrot.slane %v676_v45, 2  ;;  %v690_v61 = vrot.slane %v682_v33, 2  ;;  %v771_v40 = vrot.slane %v682_v33, 6  ;;  %vm929_vm13 = vcmp.eq.s32.totalorder %v3232_v32, 4 }
 0x233   : > { %vm930_vm14 = vcmp.eq.s32.totalorder %v3254_v58, 4  ;;  %v691_v30 = vrot.slane %v683_v31, 2  ;;  %v772_v63 = vrot.slane %v683_v31, 6  ;;  %v765_v10 = vrot.slane %v676_v45, 6 }
 0x234   : > { %v849_v14 = vmin.f32 %v760_v11, %v841_v46  ;;  %vm978_vm15 = vcmp.eq.s32.totalorder %v3240_v49, 4  ;;  %v775_v16 = vsel %vm773_vm7, %v770_v56, %v771_v40  ;;  %v699_v26 = vsel %vm692_vm6, %v684_v52, %v685_v36 }
 0x235   : > { %v866_v18 = vrot.slane %v3482_v53, 4  ;;  %v694_v60 = vsel %vm692_vm6, %v689_v38, %v690_v61  ;;  %v693_v41 = vsel %vm692_vm6, %v690_v61, %v691_v30  ;;  %v700_v0 = vsel %vm692_vm6, %v691_v30, %v684_v52 }
 0x236   : > { %v774_v20 = vsel %vm773_vm7, %v771_v40, %v772_v63  ;;  %v844_v56 = vsel %vm836_vm11, %v775_v16, 10000.0  ;;  %vm927_vm1 = vcmp.eq.s32.totalorder %v3189_v8, 4  ;;  %vm934_vm3 = vcmp.eq.s32.totalorder %v3193_v6, 4 }
 0x237   : > { %vm975_vm4 = vcmp.eq.s32.totalorder %v3195_v51, 4  ;;  %v763_v36 = vsel %vm755_vm12, %v693_v41, 10000.0  ;;  %vm4015_vm10 = vcmp.eq.s32.totalorder %v4008_v59, 2  ;;  %vm4016_vm6 = vcmp.eq.s32.totalorder %v4009_v7, 2 }
 0x238   : > { %v764_v38 = vsel %vm4015_vm10, %v700_v0, 10000.0  ;;  %v845_v62 = vsel %vm4016_vm6, %v774_v20, 10000.0  ;;  %vm4017_vm0 = vcmp.eq.s32.totalorder %v4010_v2, 2  ;;  %vm976_vm11 = vcmp.eq.s32.totalorder %v4018_v4, 4 }
 0x239   : > { %v757_v48 = vsel %vm4017_vm0, %v699_v26, 10000.0  ;;  %vm977_vm2 = vcmp.eq.s32.totalorder %v4019_v1, 4  ;;  %v852_v5 = vmin.f32 %v763_v36, %v844_v56  ;;  %v853_v12 = vmin.f32 %v764_v38, %v845_v62 }
 0x23a   : > { %v780_v25 = vsel %vm773_vm7, %v765_v10, %v766_v24  ;;  %v781_v59 = vsel %vm773_vm7, %v772_v63, %v765_v10  ;;  %v857_v44 = vmin.f32 %v3371_v57, %v849_v14  ;;  %v762_v27 = vsel %vm754_vm9, %v694_v60, 10000.0 }
 0x23b   : > { %v838_v7 = vsel %vm830_vm5, %v781_v59, 10000.0  ;;  %v839_v2 = vsel %vm831_vm8, %v780_v25, 10000.0  ;;  %vm931_vm12 = vcmp.eq.s32.totalorder %v3256_v15, 4  ;;  %vm932_vm0 = vcmp.eq.s32.totalorder %v3276_v47, 4  ;;  %v4031_v59 = vld [vmem:[#allocation13_spill] sm:$0xff] }
 0x23c   : > { %vm980_vm10 = vcmp.eq.s32.totalorder %v3280_v39, 4  ;;  %v860_v24 = vmin.f32 %v682_v33, %v852_v5  ;;  %v861_v28 = vmin.f32 %v683_v31, %v853_v12  ;;  %v846_v43 = vmin.f32 %v757_v48, %v838_v7  ;;  %v4032_v7 = vld [vmem:[#allocation15_spill] sm:$0xff] }
 0x23d   : > { %v847_v21 = vmin.f32 %v3466_v50, %v839_v2  ;;  %v864_v35 = vrot.slane %v3476_v55, 4  ;;  %v865_v19 = vrot.slane %v857_v44, 4  ;;  %v851_v23 = vmin.f32 %v762_v27, %v843_v34  ;;  %v4034_v27 = vld [vmem:[#allocation17_spill] sm:$0xff] }
 0x23e   : > { %vm933_vm7 = vcmp.eq.s32.totalorder %v3282_v13, 4  ;;  %v869_v22 = vrot.slane %v861_v28, 4  ;;  %v854_v57 = vmin.f32 %v676_v45, %v846_v43  ;;  %v868_v46 = vrot.slane %v860_v24, 4 }
 0x23f   : > { %v855_v11 = vmin.f32 %v3341_v37, %v847_v21  ;;  %vm4020_vm9 = vcmp.lt.s32.totalorder %v2877_v54, 4  ;;  %v859_v31 = vmin.f32 %v3417_v29, %v851_v23  ;;  %v1051_v2 = vpack.c.bf16 %v4032_v7, %v4031_v59  ;;  %v4035_v21 = vld [vmem:[#allocation14_spill] sm:$0xff]  ;;  %v4037_v23 = vld [vmem:[#allocation16_spill] sm:$0xff] }
 0x240   : > { %v874_v33 = vsel %vm4020_vm9, %v865_v19, %v866_v18  ;;  %vm4021_vm5 = vmmov %vm4020_vm9  ;;  %v862_v34 = vrot.slane %v854_v57, 4  ;;  %vm4022_vm9 = vcmp.eq.s32.totalorder %v3278_v3, 4 }
 0x241   : > { %v875_v50 = vsel %vm4021_vm5, %v864_v35, %v865_v19  ;;  %v863_v52 = vrot.slane %v855_v11, 4  ;;  %v938_v37 = vsel %vm930_vm14, %v874_v33, 10000.0  ;;  %v867_v40 = vrot.slane %v859_v31, 4  ;;  %vm4023_vm6 = vmmov %vm4021_vm5 }
 0x242   : > { %v937_v45 = vsel %vm929_vm13, %v875_v50, 10000.0  ;;  %v986_v61 = vsel %vm978_vm15, %v875_v50, 10000.0  ;;  %v987_v30 = vsel %vm4022_vm9, %v874_v33, 10000.0  ;;  %v871_v29 = vsel %vm4021_vm5, %v868_v46, %v869_v22  ;;  %vm4024_vm8 = vmmov %vm4021_vm5 }
 0x243   : > { %v876_v63 = vsel %vm4023_vm6, %v863_v52, %v864_v35  ;;  %v877_v32 = vsel %vm4024_vm8, %v862_v34, %v863_v52  ;;  %vm4025_vm13 = vmmov %vm4021_vm5  ;;  %v994_v10 = vmin.f32 %v938_v37, %v986_v61  ;;  %vm4026_vm14 = vcmp.eq.s32.totalorder %v3191_v17, 4  ;;  %v4036_v35 = vld [vmem:[#allocation18_spill] sm:$0xff] }
 0x244   : > { %v878_v58 = vsel %vm4025_vm13, %v869_v22, %v862_v34  ;;  %v935_v49 = vsel %vm927_vm1, %v877_v32, 10000.0  ;;  %v936_v3 = vsel %vm4026_vm14, %v876_v63, 10000.0  ;;  %v984_v26 = vsel %vm976_vm11, %v877_v32, 10000.0  ;;  %vm4027_vm15 = vmmov %vm4021_vm5  ;;  %v4038_v22 = vld [vmem:[#allocation19_spill] sm:$0xff] }
 0x245   : > { %v942_v14 = vsel %vm934_vm3, %v878_v58, 10000.0  ;;  %v983_v16 = vsel %vm975_vm4, %v878_v58, 10000.0  ;;  %v985_v60 = vsel %vm977_vm2, %v876_v63, 10000.0  ;;  %v3576_v0 = vmin.f32 %v857_v44, %v994_v10  ;;  %vm4028_vm1 = vmmov %vm4021_vm5  ;;  %v4033_v44 = vld [vmem:[#allocation12_spill] sm:$0xff] }
 0x246   : > { %v991_v41 = vmin.f32 %v935_v49, %v983_v16  ;;  %v992_v8 = vmin.f32 %v936_v3, %v984_v26  ;;  %v993_v20 = vmin.f32 %v937_v45, %v985_v60  ;;  %v872_v17 = vsel %vm4027_vm15, %v867_v40, %v868_v46 }
 0x247   : > { %v873_v6 = vsel %vm4028_vm1, %v866_v18, %v867_v40  ;;  %v940_v36 = vsel %vm932_vm0, %v872_v17, 10000.0  ;;  %v941_v54 = vsel %vm933_vm7, %v871_v29, 10000.0  ;;  %vm4029_vm2 = vcmp.eq.s32.totalorder %v3308_v9, 4 }
 0x248   : > { %v3584_v51 = vmin.f32 %v854_v57, %v991_v41  ;;  %v939_v56 = vsel %vm931_vm12, %v873_v6, 10000.0  ;;  %v988_v38 = vsel %vm980_vm10, %v873_v6, 10000.0  ;;  %v3592_v62 = vmin.f32 %v855_v11, %v992_v8 }
 0x249   : > { %v3595_v48 = vmin.f32 %v3476_v55, %v993_v20  ;;  %v995_v4 = vmin.f32 %v939_v56, %v987_v30  ;;  %v996_v1 = vmin.f32 %v940_v36, %v988_v38  ;;  %v989_v15 = vsel %vm4029_vm2, %v872_v17, 10000.0 }
 0x24a   : > { %vm4030_vm3 = vcmp.eq.s32.totalorder %v3310_v42, 4  ;;  %v1047_v39 = vpack.c.bf16 %v3592_v62, %v3584_v51  ;;  %v997_v12 = vmin.f32 %v941_v54, %v989_v15  ;;  %v1052_v43 = vpack.c.bf16 %v4034_v27, %v4033_v44 }
 0x24b   : > { %v990_v47 = vsel %vm4030_vm3, %v871_v29, 10000.0  ;;  %v1048_v18 = vpack.c.bf16 %v3576_v0, %v3595_v48  ;;  %v3608_v55 = vmin.f32 %v3482_v53, %v995_v4  ;;  %v3610_v5 = vmin.f32 %v859_v31, %v996_v1 }
 0x24c   : > { %v998_v13 = vmin.f32 %v942_v14, %v990_v47  ;;  %2069 = vmatprep.mubr.bf16.mxu0 %v1047_v39  ;;  %v3614_v42 = vmin.f32 %v860_v24, %v997_v12  ;;  %v1053_v19 = vpack.c.bf16 %v4036_v35, %v4035_v21  ;;  %v1031_v24 = vmul.f32 %v3584_v51, %v4031_v59 }
 0x24d   : > { %v1049_v9 = vpack.c.bf16 %v3610_v5, %v3608_v55  ;;  %2070 = vmatmul.mubr.bf16.vlgmr.msra.gmra.mrb[0].mxu0 %v1048_v18  ;;  %v1054_v57 = vpack.c.bf16 %v4038_v22, %v4037_v23  ;;  %v1033_v46 = vmul.f32 %v3595_v48, %v4033_v44  ;;  %v1035_v33 = vmul.f32 %v3608_v55, %v4035_v21 }
 0x24e   : > { %v3616_v25 = vmin.f32 %v861_v28, %v998_v13  ;;  %v1032_v28 = vmul.f32 %v3592_v62, %v4032_v7  ;;  %v1036_v50 = vmul.f32 %v3610_v5, %v4036_v35  ;;  %v1034_v31 = vmul.f32 %v3576_v0, %v4034_v27 }
 0x24f   : > { %2073 = vmatprep.mubr.bf16.mxu0 %v1049_v9  ;;  %v1037_v45 = vmul.f32 %v3614_v42, %v4037_v23  ;;  %v1039_v61 = vmul.f32 %v3584_v51, %v3584_v51  ;;  %v1040_v40 = vmul.f32 %v3592_v62, %v3592_v62  ;;  %v1041_v63 = vmul.f32 %v3595_v48, %v3595_v48 }
 0x250   : > { %v1050_v53 = vpack.c.bf16 %v3616_v25, %v3614_v42  ;;  %v1055_v11 = vpack.c.bf16 %v1032_v28, %v1031_v24  ;;  %v1056_v34 = vpack.c.bf16 %v1034_v31, %v1033_v46  ;;  %v1057_v52 = vpack.c.bf16 %v1036_v50, %v1035_v33  ;;  %v3667_v46 = vld [vmem:[#allocation5 + $0x8] sm:$0xff]  }
 0x251   : > { %v1038_v37 = vmul.f32 %v3616_v25, %v4038_v22  ;;  %v1059_v29 = vpack.c.bf16 %v1040_v40, %v1039_v61  ;;  %v1043_v32 = vmul.f32 %v3608_v55, %v3608_v55  ;;  %v1044_v58 = vmul.f32 %v3610_v5, %v3610_v5 }
 0x252   : > { %v1042_v10 = vmul.f32 %v3576_v0, %v3576_v0  ;;  %v1045_v14 = vmul.f32 %v3614_v42, %v3614_v42  ;;  %v1046_v16 = vmul.f32 %v3616_v25, %v3616_v25  ;;  %v2431_v60 = vmov 0  }
 0x253   : > { %v1058_v30 = vpack.c.bf16 %v1038_v37, %v1037_v45  ;;  %v1061_v3 = vpack.c.bf16 %v1044_v58, %v1043_v32  ;;  %1353 = vmatprep.mubr.bf16.mxu1 %v2431_v60  ;;  %vm1308_vm4 = vcmask 523264   ;;  %v3672_v37 = vld [vmem:[#allocation5 + $0x10] sm:$0xff]   ;;  %v3677_v58 = vld [vmem:[#allocation5 + $0x18] sm:$0xff]  }
 0x254   : > { %v1060_v49 = vpack.c.bf16 %v1042_v10, %v1041_v63  ;;  %v1062_v26 = vpack.c.bf16 %v1046_v16, %v1045_v14  ;;  %v2252_v14 = vld [vmem:[#allocation7] sm:$0xff]   ;;  %v2253_v16 = vld [vmem:[#allocation7 + $0x8] sm:$0xff]  }
 0x255   : > { %2074 = vmatmul.mubr.bf16.gmra.mrb[4].mxu0 %v1050_v53 }
 0x256   : > { %2077 = vmatprep.mubr.bf16.mxu0 %v1051_v2 }
 0x25d   : > { %2078 = vmatmul.mubr.bf16.gmra.mrb[8].mxu0 %v1052_v43 }
 0x25e   : > { %2081 = vmatprep.mubr.bf16.mxu0 %v1053_v19  ;;  %v3662_v19 = vld [vmem:[#allocation5] sm:$0xff]  }
 0x265   : > { %2082 = vmatmul.mubr.bf16.gmra.mrb[12].mxu0 %v1054_v57 }
 0x266   : > { %2085 = vmatprep.mubr.bf16.mxu0 %v1055_v11 }
 0x26d   : > { %2086 = vmatmul.mubr.bf16.gmra.mrb[16].mxu0 %v1056_v34 }
 0x26e   : > { %2089 = vmatprep.mubr.bf16.mxu0 %v1057_v52 }
 0x275   : > { %2090 = vmatmul.mubr.bf16.gmra.mrb[20].mxu0 %v1058_v30 }
 0x276   : > { %2093 = vmatprep.mubr.bf16.mxu0 %v1059_v29 }
 0x27d   : > { %2094 = vmatmul.mubr.bf16.gmra.mrb[24].mxu0 %v1060_v49 }
 0x27e   : > { %2097 = vmatprep.mubr.bf16.mxu0 %v1061_v3 }
 0x285   : > { %2098 = vmatmul.mubr.bf16.gmra.mrb[28].mxu0 %v1062_v26  ;;  %v2254_v26 = vld [vmem:[#allocation7 + $0x10] sm:$0xff]  }
 0x286   : > { %1716 = vmatprep.mubr.bf16.mxu0 %v2431_v60 }
 0x320   : > { %v2071_v41 = vpop.f32.mrb[0].mxu0 }
 0x321   : > { %v1145_v8 = vpop.f32.mrb[1].mxu0 }
 0x322   : > { %v2072_v20 = vpop.f32.mrb[2].mxu0 }
 0x323   : > { %v1276_v17 = vpack.c.bf16 %v2072_v20, %v2071_v41  ;;  %v1148_v6 = vpop.f32.mrb[3].mxu0  ;;  %v2255_v41 = vld [vmem:[#allocation7 + $0x18] sm:$0xff]   ;;  %v2257_v20 = vld [vmem:[#allocation7 + $0x28] sm:$0xff]  }
 0x324   : > { %v1272_v56 = vpack.c.bf16 %v1148_v6, %v1145_v8  ;;  %v2256_v8 = vld [vmem:[#allocation7 + $0x20] sm:$0xff]   ;;  %v2259_v6 = vld [vmem:[#allocation7 + $0x38] sm:$0xff]  }
 0x328   : > { %v2075_v36 = vpop.f32.mrb[4].mxu0 }
 0x329   : > { %v1161_v38 = vpop.f32.mrb[5].mxu0 }
 0x32a   : > { %v2076_v4 = vpop.f32.mrb[6].mxu0 }
 0x32b   : > { %v1284_v1 = vpack.c.bf16 %v2076_v4, %v2075_v36  ;;  %v1164_v54 = vpop.f32.mrb[7].mxu0 }
 0x32c   : > { %v1280_v15 = vpack.c.bf16 %v1164_v54, %v1161_v38 }
 0x330   : > { %v2079_v47 = vpop.f32.mrb[8].mxu0 }
 0x331   : > { %v1177_v39 = vpop.f32.mrb[9].mxu0 }
 0x332   : > { %v2080_v18 = vpop.f32.mrb[10].mxu0 }
 0x333   : > { %v1277_v12 = vpack.c.bf16 %v2080_v18, %v2079_v47  ;;  %v1180_v13 = vpop.f32.mrb[11].mxu0 }
 0x334   : > { %v1273_v9 = vpack.c.bf16 %v1180_v13, %v1177_v39 }
 0x336   : > { %1321 = vmatprep.subr.bf16.mxu1 %v1273_v9 }
 0x337   : > { %1322 = vmatpush1.bf16.msra.mxu1 %v1272_v56 }
 0x338   : > { %v2083_v59 = vpop.f32.mrb[12].mxu0  ;;  %1323 = vmatprep.subr.bf16.mxu1 %v1277_v12 }
 0x339   : > { %v1193_v7 = vpop.f32.mrb[13].mxu0 }
 0x33a   : > { %v2084_v2 = vpop.f32.mrb[14].mxu0 }
 0x33b   : > { %v1285_v53 = vpack.c.bf16 %v2084_v2, %v2083_v59  ;;  %v1196_v44 = vpop.f32.mrb[15].mxu0  ;;  %1324 = vmatpush1.bf16.msra.mxu1 %v1276_v17  ;;  %v2258_v17 = vld [vmem:[#allocation7 + $0x30] sm:$0xff]  }
 0x33c   : > { %v1281_v27 = vpack.c.bf16 %v1196_v44, %v1193_v7 }
 0x33e   : > { %1325 = vmatprep.subr.bf16.mxu1 %v1281_v27 }
 0x33f   : > { %1326 = vmatpush1.bf16.msra.mxu1 %v1280_v15 }
 0x340   : > { %v2087_v43 = vpop.f32.mrb[16].mxu0  ;;  %1327 = vmatprep.subr.bf16.mxu1 %v1285_v53 }
 0x341   : > { %v1209_v21 = vpop.f32.mrb[17].mxu0 }
 0x342   : > { %v2088_v35 = vpop.f32.mrb[18].mxu0 }
 0x343   : > { %v1278_v24 = vpack.c.bf16 %v2088_v35, %v2087_v43  ;;  %v1212_v28 = vpop.f32.mrb[19].mxu0  ;;  %1328 = vmatpush1.bf16.msra.mxu1 %v1284_v1 }
 0x344   : > { %v1274_v23 = vpack.c.bf16 %v1212_v28, %v1209_v21 }
 0x346   : > { %1995 = vmatmul.mubr.msk.bf16.vlgmr.msra.gmra.mrb[0].mxu1 %vm1308_vm4, %v3662_v19 }
 0x347   : > { %1363 = vmatprep.mubr.bf16.mxu1 %v2431_v60 }
 0x348   : > { %v2091_v22 = vpop.f32.mrb[20].mxu0 }
 0x349   : > { %v1225_v57 = vpop.f32.mrb[21].mxu0 }
 0x34a   : > { %v2092_v11 = vpop.f32.mrb[22].mxu0 }
 0x34b   : > { %v1286_v33 = vpack.c.bf16 %v2092_v11, %v2091_v22  ;;  %v1228_v50 = vpop.f32.mrb[23].mxu0 }
 0x34c   : > { %v1282_v31 = vpack.c.bf16 %v1228_v50, %v1225_v57 }
 0x34e   : > { %1996 = vmatmul.mubr.msk.bf16.gmra.mrb[4].mxu1 %vm1308_vm4, %v3667_v46 }
 0x34f   : > { %1373 = vmatprep.mubr.bf16.mxu1 %v2431_v60 }
 0x350   : > { %v2095_v34 = vpop.f32.mrb[24].mxu0 }
 0x351   : > { %v1241_v52 = vpop.f32.mrb[25].mxu0 }
 0x352   : > { %v2096_v45 = vpop.f32.mrb[26].mxu0 }
 0x353   : > { %v1279_v61 = vpack.c.bf16 %v2096_v45, %v2095_v34  ;;  %v1244_v40 = vpop.f32.mrb[27].mxu0 }
 0x354   : > { %v1275_v30 = vpack.c.bf16 %v1244_v40, %v1241_v52 }
 0x356   : > { %1997 = vmatmul.mubr.msk.bf16.gmra.mrb[8].mxu1 %vm1308_vm4, %v3672_v37  ;;  %1394 = vmatprep.subr.bf16.mxu1 %v1275_v30 }
 0x357   : > { %1395 = vmatpush1.bf16.msra.mxu1 %v1274_v23  ;;  %1383 = vmatprep.mubr.bf16.mxu1 %v2431_v60 }
 0x358   : > { %v2099_v29 = vpop.f32.mrb[28].mxu0  ;;  %1396 = vmatprep.subr.bf16.mxu1 %v1279_v61 }
 0x359   : > { %v1257_v63 = vpop.f32.mrb[29].mxu0 }
 0x35a   : > { %v2100_v32 = vpop.f32.mrb[30].mxu0 }
 0x35b   : > { %v1287_v10 = vpack.c.bf16 %v2100_v32, %v2099_v29  ;;  %v1260_v49 = vpop.f32.mrb[31].mxu0  ;;  %1397 = vmatpush1.bf16.msra.mxu1 %v1278_v24 }
 0x35c   : > { %v1283_v3 = vpack.c.bf16 %v1260_v49, %v1257_v63 }
 0x35e   : > { %1998 = vmatmul.mubr.msk.bf16.gmra.mrb[12].mxu1 %vm1308_vm4, %v3677_v58  ;;  %1398 = vmatprep.subr.bf16.mxu1 %v1283_v3 }
 0x35f   : > { %1399 = vmatpush1.bf16.msra.mxu1 %v1282_v31  ;;  %1426 = vmatprep.mubr.bf16.mxu1 %v2431_v60 }
 0x360   : > { %1400 = vmatprep.subr.bf16.mxu1 %v1287_v10 }
 0x363   : > { %1401 = vmatpush1.bf16.msra.mxu1 %v1286_v33 }
 0x364   : > { %2101 = vmatprep.subr.bf16.mxu1 %v2252_v14 }
 0x366   : > { %1999 = vmatmul.mubr.msk.bf16.vlgmr.msra.gmra.mrb[16].mxu1 %vm1308_vm4, %v3662_v19 }
 0x367   : > { %1436 = vmatprep.mubr.bf16.mxu1 %v2431_v60  ;;  %2102 = vmatpush3.bf16.msra.mxu1 %v2252_v14 }
 0x368   : > { %2103 = vmatprep.subr.bf16.mxu1 %v2253_v16 }
 0x36b   : > { %2104 = vmatpush3.bf16.msra.mxu1 %v2253_v16 }
 0x36c   : > { %2105 = vmatprep.subr.bf16.mxu1 %v2254_v26 }
 0x36e   : > { %2000 = vmatmul.mubr.msk.bf16.gmra.mrb[20].mxu1 %vm1308_vm4, %v3667_v46 }
 0x36f   : > { %1446 = vmatprep.mubr.bf16.mxu1 %v2431_v60  ;;  %2106 = vmatpush3.bf16.msra.mxu1 %v2254_v26 }
 0x370   : > { %2107 = vmatprep.subr.bf16.mxu1 %v2255_v41 }
 0x373   : > { %2108 = vmatpush3.bf16.msra.mxu1 %v2255_v41 }
 0x374   : > { %2109 = vmatprep.subr.bf16.mxu1 %v2256_v8 }
 0x376   : > { %2001 = vmatmul.mubr.msk.bf16.gmra.mrb[24].mxu1 %vm1308_vm4, %v3672_v37 }
 0x377   : > { %1456 = vmatprep.mubr.bf16.mxu1 %v2431_v60  ;;  %2110 = vmatpush3.bf16.msra.mxu1 %v2256_v8 }
 0x378   : > { %2111 = vmatprep.subr.bf16.mxu1 %v2257_v20 }
 0x37b   : > { %2112 = vmatpush3.bf16.msra.mxu1 %v2257_v20 }
 0x37c   : > { %2113 = vmatprep.subr.bf16.mxu1 %v2258_v17 }
 0x37e   : > { %2002 = vmatmul.mubr.msk.bf16.gmra.mrb[28].mxu1 %vm1308_vm4, %v3677_v58 }
 0x37f   : > { %2114 = vmatpush3.bf16.msra.mxu1 %v2258_v17 }
 0x380   : > { %2115 = vmatprep.subr.bf16.mxu1 %v2259_v6 }
 0x383   : > { %2116 = vmatpush3.bf16.msra.mxu1 %v2259_v6 }
 0x419   : > { %v1355_v56 = vpop.f32.mrb[0].mxu1 }
 0x41a   : > { %v3693_v36 = vmul.f32 0.00027777778, %v1355_v56  ;;  %v1357_v38 = vpop.f32.mrb[1].mxu1 }
 0x41b   : > { %v3695_v4 = vmul.f32 0.00027777778, %v1357_v38  ;;  %v1359_v1 = vpop.f32.mrb[2].mxu1 }
 0x41c   : > { %v3697_v54 = vmul.f32 0.00027777778, %v1359_v1  ;;  %v1361_v15 = vpop.f32.mrb[3].mxu1  ;;  %v1515_v16 = vmul.f32 %v3693_v36, %v3693_v36 }
 0x41d   : > { %v3701_v47 = vmul.f32 %v3695_v4, %v3693_v36  ;;  %v3703_v39 = vmul.f32 0.00027777778, %v1361_v15 }
 0x41e   : > { %v1516_v56 = vmul.f32 %v3697_v54, %v3697_v54 }
 0x41f   : > { %v3707_v18 = vmul.f32 %v3703_v39, %v3697_v54 }
 0x421   : > { %v1365_v12 = vpop.f32.mrb[4].mxu1 }
 0x422   : > { %v3709_v13 = vmul.f32 0.00027777778, %v1365_v12  ;;  %v1367_v9 = vpop.f32.mrb[5].mxu1 }
 0x423   : > { %v3711_v59 = vmul.f32 0.00027777778, %v1367_v9  ;;  %v1369_v7 = vpop.f32.mrb[6].mxu1 }
 0x424   : > { %v3713_v2 = vmul.f32 0.00027777778, %v1369_v7  ;;  %v1371_v53 = vpop.f32.mrb[7].mxu1 }
 0x425   : > { %v3717_v44 = vmul.f32 %v3711_v59, %v3709_v13  ;;  %v3719_v27 = vmul.f32 0.00027777778, %v1371_v53 }
 0x427   : > { %v3723_v43 = vmul.f32 %v3719_v27, %v3713_v2 }
 0x429   : > { %v1375_v21 = vpop.f32.mrb[8].mxu1 }
 0x42a   : > { %v3725_v35 = vmul.f32 0.00027777778, %v1375_v21  ;;  %v1377_v24 = vpop.f32.mrb[9].mxu1 }
 0x42b   : > { %v3727_v28 = vmul.f32 0.00027777778, %v1377_v24  ;;  %v1379_v23 = vpop.f32.mrb[10].mxu1 }
 0x42c   : > { %v3729_v22 = vmul.f32 0.00027777778, %v1379_v23  ;;  %v1381_v57 = vpop.f32.mrb[11].mxu1 }
 0x42d   : > { %v3733_v11 = vmul.f32 %v3727_v28, %v3725_v35  ;;  %v3735_v33 = vmul.f32 0.00027777778, %v1381_v57 }
 0x42f   : > { %v3739_v50 = vmul.f32 %v3735_v33, %v3729_v22 }
 0x431   : > { %v1385_v31 = vpop.f32.mrb[12].mxu1 }
 0x432   : > { %v3741_v34 = vmul.f32 0.00027777778, %v1385_v31  ;;  %v1387_v52 = vpop.f32.mrb[13].mxu1 }
 0x433   : > { %v3743_v45 = vmul.f32 0.00027777778, %v1387_v52  ;;  %v1389_v61 = vpop.f32.mrb[14].mxu1 }
 0x434   : > { %v3745_v40 = vmul.f32 0.00027777778, %v1389_v61  ;;  %v1391_v30 = vpop.f32.mrb[15].mxu1 }
 0x435   : > { %v3749_v29 = vmul.f32 %v3743_v45, %v3741_v34  ;;  %v3751_v63 = vmul.f32 0.00027777778, %v1391_v30 }
 0x437   : > { %v3755_v32 = vmul.f32 %v3751_v63, %v3745_v40 }
 0x439   : > { %v1428_v10 = vpop.f32.mrb[16].mxu1 }
 0x43a   : > { %v1469_v49 = vmul.f32 0.00027777778, %v1428_v10  ;;  %v1430_v3 = vpop.f32.mrb[17].mxu1 }
 0x43b   : > { %v1470_v14 = vmul.f32 0.00027777778, %v1430_v3  ;;  %v1432_v26 = vpop.f32.mrb[18].mxu1 }
 0x43c   : > { %v1507_v41 = vsub.f32 %v1469_v49, %v3701_v47  ;;  %v1473_v8 = vmul.f32 0.00027777778, %v1432_v26  ;;  %v1434_v20 = vpop.f32.mrb[19].mxu1  ;;  %v1517_v47 = vmul.f32 %v3709_v13, %v3709_v13 }
 0x43d   : > { %v1523_v17 = vsub.f32 %v1470_v14, %v1515_v16  ;;  %v1474_v6 = vmul.f32 0.00027777778, %v1434_v20 }
 0x43e   : > { %v1508_v38 = vsub.f32 %v1473_v8, %v3707_v18  ;;  %v1518_v18 = vmul.f32 %v3713_v2, %v3713_v2 }
 0x43f   : > { %v1531_v1 = vadd.f32 0.0001, %v1523_v17  ;;  %v1524_v15 = vsub.f32 %v1474_v6, %v1516_v56 }
 0x441   : > { %2236 = vrcp.f32 %v1531_v1  ;;  %v1532_v12 = vadd.f32 0.0001, %v1524_v15  ;;  %v1438_v9 = vpop.f32.mrb[20].mxu1 }
 0x442   : > { %v1477_v7 = vmul.f32 0.00027777778, %v1438_v9  ;;  %v1440_v53 = vpop.f32.mrb[21].mxu1 }
 0x443   : > { %2238 = vrcp.f32 %v1532_v12  ;;  %v1478_v21 = vmul.f32 0.00027777778, %v1440_v53  ;;  %v1442_v24 = vpop.f32.mrb[22].mxu1 }
 0x444   : > { %v1509_v23 = vsub.f32 %v1477_v7, %v3717_v44  ;;  %v1481_v57 = vmul.f32 0.00027777778, %v1442_v24  ;;  %v1444_v31 = vpop.f32.mrb[23].mxu1  ;;  %v1519_v44 = vmul.f32 %v3725_v35, %v3725_v35  ;;  %v1520_v7 = vmul.f32 %v3729_v22, %v3729_v22 }
 0x445   : > { %v1525_v52 = vsub.f32 %v1478_v21, %v1517_v47  ;;  %v1482_v61 = vmul.f32 0.00027777778, %v1444_v31 }
 0x446   : > { %v1510_v30 = vsub.f32 %v1481_v57, %v3723_v43 }
 0x447   : > { %v1533_v10 = vadd.f32 0.0001, %v1525_v52  ;;  %v1526_v49 = vsub.f32 %v1482_v61, %v1518_v18 }
 0x449   : > { %2240 = vrcp.f32 %v1533_v10  ;;  %v1534_v3 = vadd.f32 0.0001, %v1526_v49  ;;  %v1448_v14 = vpop.f32.mrb[24].mxu1 }
 0x44a   : > { %v1485_v16 = vmul.f32 0.00027777778, %v1448_v14  ;;  %v1450_v26 = vpop.f32.mrb[25].mxu1 }
 0x44b   : > { %v2237_v8 = vpop.eup %2236  ;;  %2242 = vrcp.f32 %v1534_v3  ;;  %v1486_v20 = vmul.f32 0.00027777778, %v1450_v26  ;;  %v1452_v17 = vpop.f32.mrb[26].mxu1 }
 0x44c   : > { %v1511_v6 = vsub.f32 %v1485_v16, %v3733_v11  ;;  %v1489_v56 = vmul.f32 0.00027777778, %v1452_v17  ;;  %v1454_v1 = vpop.f32.mrb[27].mxu1  ;;  %v1547_v15 = vmul.f32 %v2237_v8, %v1507_v41  ;;  %v1522_v17 = vmul.f32 %v3745_v40, %v3745_v40 }
 0x44d   : > { %v2239_v43 = vpop.eup %2238  ;;  %v1527_v12 = vsub.f32 %v1486_v20, %v1519_v44  ;;  %v1490_v9 = vmul.f32 0.00027777778, %v1454_v1 }
 0x44e   : > { %v1512_v53 = vsub.f32 %v1489_v56, %v3739_v50  ;;  %v1548_v21 = vmul.f32 %v2239_v43, %v1508_v38  ;;  %v1555_v47 = vmul.f32 %v1547_v15, %v3693_v36  ;;  %v1521_v36 = vmul.f32 %v3741_v34, %v3741_v34 }
 0x44f   : > { %v1535_v24 = vadd.f32 0.0001, %v1527_v12  ;;  %v1528_v57 = vsub.f32 %v1490_v9, %v1520_v7 }
 0x450   : > { %v1571_v31 = vpack.c.bf16 %v1548_v21, %v1547_v15  ;;  %v1556_v52 = vmul.f32 %v1548_v21, %v3697_v54  ;;  %v1563_v11 = vsub.f32 %v3695_v4, %v1555_v47 }
 0x451   : > { %2244 = vrcp.f32 %v1535_v24  ;;  %v1536_v41 = vadd.f32 0.0001, %v1528_v57  ;;  %v1458_v61 = vpop.f32.mrb[28].mxu1 }
 0x452   : > { %v1493_v18 = vmul.f32 0.00027777778, %v1458_v61  ;;  %v1460_v10 = vpop.f32.mrb[29].mxu1  ;;  %2117 = vmatprep.mubr.bf16.mxu1 %v1571_v31  ;;  %v1564_v49 = vsub.f32 %v3703_v39, %v1556_v52 }
 0x453   : > { %v2241_v3 = vpop.eup %2240  ;;  %2246 = vrcp.f32 %v1536_v41  ;;  %v1494_v50 = vmul.f32 0.00027777778, %v1460_v10  ;;  %v1462_v38 = vpop.f32.mrb[30].mxu1 }
 0x454   : > { %v1513_v14 = vsub.f32 %v1493_v18, %v3749_v29  ;;  %v1497_v54 = vmul.f32 0.00027777778, %v1462_v38  ;;  %v1464_v16 = vpop.f32.mrb[31].mxu1  ;;  %v1549_v4 = vmul.f32 %v2241_v3, %v1509_v23  ;;  %v1575_v26 = vpack.c.bf16 %v1564_v49, %v1563_v11 }
 0x455   : > { %v2243_v8 = vpop.eup %2242  ;;  %v1529_v20 = vsub.f32 %v1494_v50, %v1521_v36  ;;  %v1498_v44 = vmul.f32 0.00027777778, %v1464_v16 }
 0x456   : > { %v1514_v39 = vsub.f32 %v1497_v54, %v3755_v32  ;;  %v1550_v56 = vmul.f32 %v2243_v8, %v1510_v30  ;;  %v1557_v1 = vmul.f32 %v1549_v4, %v3709_v13 }
 0x457   : > { %v1537_v15 = vadd.f32 0.0001, %v1529_v20  ;;  %v1530_v43 = vsub.f32 %v1498_v44, %v1522_v17 }
 0x458   : > { %v1572_v12 = vpack.c.bf16 %v1550_v56, %v1549_v4  ;;  %v1558_v29 = vmul.f32 %v1550_v56, %v3713_v2  ;;  %v1565_v9 = vsub.f32 %v3711_v59, %v1557_v1 }
 0x459   : > { %2248 = vrcp.f32 %v1537_v15  ;;  %v1538_v23 = vadd.f32 0.0001, %v1530_v43 }
 0x45a   : > { %2118 = vmatmul.mubr.bf16.vlgmr.msra.gmra.mrb[32].mxu1 %v1572_v12  ;;  %v1566_v7 = vsub.f32 %v3719_v27, %v1558_v29 }
 0x45b   : > { %v2245_v21 = vpop.eup %2244  ;;  %2250 = vrcp.f32 %v1538_v23 }
 0x45c   : > { %v1551_v47 = vmul.f32 %v2245_v21, %v1511_v6  ;;  %v1576_v24 = vpack.c.bf16 %v1566_v7, %v1565_v9 }
 0x45d   : > { %v2247_v32 = vpop.eup %2246 }
 0x45e   : > { %v1552_v30 = vmul.f32 %v2247_v32, %v1512_v53  ;;  %v1559_v13 = vmul.f32 %v1551_v47, %v3725_v35 }
 0x460   : > { %v1573_v57 = vpack.c.bf16 %v1552_v30, %v1551_v47  ;;  %v1560_v31 = vmul.f32 %v1552_v30, %v3729_v22  ;;  %v1567_v2 = vsub.f32 %v3727_v28, %v1559_v13 }
 0x462   : > { %2121 = vmatprep.mubr.bf16.mxu1 %v1573_v57  ;;  %v1568_v59 = vsub.f32 %v3735_v33, %v1560_v31 }
 0x463   : > { %v2249_v52 = vpop.eup %2248 }
 0x464   : > { %v1553_v11 = vmul.f32 %v2249_v52, %v1513_v14  ;;  %v1577_v41 = vpack.c.bf16 %v1568_v59, %v1567_v2 }
 0x465   : > { %v2251_v27 = vpop.eup %2250 }
 0x466   : > { %v1554_v61 = vmul.f32 %v2251_v27, %v1514_v39  ;;  %v1561_v6 = vmul.f32 %v1553_v11, %v3741_v34 }
 0x468   : > { %v1574_v18 = vpack.c.bf16 %v1554_v61, %v1553_v11  ;;  %v1562_v53 = vmul.f32 %v1554_v61, %v3745_v40  ;;  %v1569_v35 = vsub.f32 %v3743_v45, %v1561_v6 }
 0x46a   : > { %2122 = vmatmul.mubr.bf16.gmra.mrb[36].mxu1 %v1574_v18  ;;  %v1570_v22 = vsub.f32 %v3751_v63, %v1562_v53 }
 0x46b   : > { %2125 = vmatprep.mubr.bf16.mxu1 %v1575_v26 }
 0x46c   : > { %v1578_v28 = vpack.c.bf16 %v1570_v22, %v1569_v35 }
 0x472   : > { %2126 = vmatmul.mubr.bf16.gmra.mrb[40].mxu1 %v1576_v24 }
 0x473   : > { %2129 = vmatprep.mubr.bf16.mxu1 %v1577_v41 }
 0x47a   : > { %2130 = vmatmul.mubr.bf16.gmra.mrb[44].mxu1 %v1578_v28 }
 0x47b   : > { %1746 = vmatprep.mubr.bf16.mxu1 %v2431_v60 }
 0x52d   : > { %v2119_v33 = vpop.f32.mrb[32].mxu1 }
 0x52e   : > { %v1613_v10 = vpop.f32.mrb[33].mxu1 }
 0x52f   : > { %v2120_v49 = vpop.f32.mrb[34].mxu1 }
 0x530   : > { %v1678_v3 = vpack.c.bf16 %v2120_v49, %v2119_v33  ;;  %v1616_v34 = vpop.f32.mrb[35].mxu1 }
 0x531   : > { %v1676_v50 = vpack.c.bf16 %v1616_v34, %v1613_v10 }
 0x53d   : > { %v2123_v36 = vpop.f32.mrb[36].mxu1 }
 0x53e   : > { %v1629_v40 = vpop.f32.mrb[37].mxu1 }
 0x53f   : > { %v2124_v38 = vpop.f32.mrb[38].mxu1 }
 0x540   : > { %v1682_v45 = vpack.c.bf16 %v2124_v38, %v2123_v36  ;;  %v1632_v14 = vpop.f32.mrb[39].mxu1 }
 0x541   : > { %v1680_v54 = vpack.c.bf16 %v1632_v14, %v1629_v40 }
 0x545   : > { %v2127_v63 = vpop.f32.mrb[40].mxu1 }
 0x546   : > { %v1645_v16 = vpop.f32.mrb[41].mxu1 }
 0x547   : > { %v2128_v4 = vpop.f32.mrb[42].mxu1 }
 0x548   : > { %v1679_v26 = vpack.c.bf16 %v2128_v4, %v2127_v63  ;;  %v1648_v8 = vpop.f32.mrb[43].mxu1 }
 0x549   : > { %v1677_v20 = vpack.c.bf16 %v1648_v8, %v1645_v16 }
 0x54b   : > { %1684 = vmatprep.subr.bf16.mxu0 %v1677_v20  ;;  %2133 = vmatprep.subr.bf16.mxu1 %v1677_v20 }
 0x54c   : > { %1685 = vmatpush1.bf16.msra.mxu0 %v1676_v50  ;;  %2137 = vmatpush1.bf16.msra.mxu1 %v1676_v50 }
 0x54d   : > { %v2131_v44 = vpop.f32.mrb[44].mxu1  ;;  %1686 = vmatprep.subr.bf16.mxu0 %v1679_v26  ;;  %2134 = vmatprep.subr.bf16.mxu1 %v1679_v26 }
 0x54e   : > { %v1661_v17 = vpop.f32.mrb[45].mxu1 }
 0x54f   : > { %v2132_v39 = vpop.f32.mrb[46].mxu1 }
 0x550   : > { %v1683_v56 = vpack.c.bf16 %v2132_v39, %v2131_v44  ;;  %v1664_v1 = vpop.f32.mrb[47].mxu1  ;;  %1687 = vmatpush1.bf16.msra.mxu0 %v1678_v3  ;;  %2138 = vmatpush1.bf16.msra.mxu1 %v1678_v3 }
 0x551   : > { %v1681_v15 = vpack.c.bf16 %v1664_v1, %v1661_v17 }
 0x553   : > { %1688 = vmatprep.subr.bf16.mxu0 %v1681_v15  ;;  %2135 = vmatprep.subr.bf16.mxu1 %v1681_v15 }
 0x554   : > { %1689 = vmatpush1.bf16.msra.mxu0 %v1680_v54  ;;  %2139 = vmatpush1.bf16.msra.mxu1 %v1680_v54 }
 0x555   : > { %1690 = vmatprep.subr.bf16.mxu0 %v1683_v56  ;;  %2136 = vmatprep.subr.bf16.mxu1 %v1683_v56 }
 0x558   : > { %1691 = vmatpush1.bf16.msra.mxu0 %v1682_v45  ;;  %2140 = vmatpush1.bf16.msra.mxu1 %v1682_v45 }
 0x55b   : > { %2003 = vmatmul.mubr.msk.bf16.vlgmr.msra.gmra.mrb[32].mxu0 %vm1308_vm4, %v3662_v19  ;;  %2006 = vmatmul.mubr.msk.bf16.vlgmr.msra.gmra.mrb[48].mxu1 %vm1308_vm4, %v3677_v58 }
 0x55c   : > { %1726 = vmatprep.mubr.bf16.mxu0 %v2431_v60 }
 0x563   : > { %2004 = vmatmul.mubr.msk.bf16.gmra.mrb[36].mxu0 %vm1308_vm4, %v3667_v46 }
 0x564   : > { %1736 = vmatprep.mubr.bf16.mxu0 %v2431_v60 }
 0x56b   : > { %2005 = vmatmul.mubr.msk.bf16.gmra.mrb[40].mxu0 %vm1308_vm4, %v3672_v37 }
 0x62e   : > { %v1718_v43 = vpop.f32.mrb[32].mxu0  ;;  %v1748_v12 = vpop.f32.mrb[48].mxu1 }
 0x62f   : > { %v1757_v29 = vmul.f32 0.00027777778, %v1718_v43  ;;  %v1769_v9 = vmul.f32 0.00027777778, %v1748_v12  ;;  %v1720_v23 = vpop.f32.mrb[33].mxu0  ;;  %v1750_v19 = vpop.f32.mrb[49].mxu1 }
 0x630   : > { %v1758_v7 = vmul.f32 0.00027777778, %v1720_v23  ;;  %v1770_v21 = vmul.f32 0.00027777778, %v1750_v19  ;;  %v1722_v58 = vpop.f32.mrb[34].mxu0  ;;  %v1752_v47 = vpop.f32.mrb[50].mxu1 }
 0x631   : > { %v1773_v24 = vmul.f32 %v1757_v29, %v3584_v51  ;;  %v1779_v46 = vmul.f32 %v1769_v9, %v3614_v42  ;;  %v1759_v32 = vmul.f32 0.00027777778, %v1722_v58  ;;  %v1771_v60 = vmul.f32 0.00027777778, %v1752_v47  ;;  %v1724_v30 = vpop.f32.mrb[35].mxu0  ;;  %v1754_v13 = vpop.f32.mrb[51].mxu1 }
 0x632   : > { %v1760_v37 = vmul.f32 0.00027777778, %v1724_v30  ;;  %v1772_v57 = vmul.f32 0.00027777778, %v1754_v13 }
 0x633   : > { %v1781_v31 = vadd.f32 %v1773_v24, %v1758_v7  ;;  %v1787_v2 = vadd.f32 %v1779_v46, %v1770_v21  ;;  %v1774_v59 = vmul.f32 %v1759_v32, %v3592_v62  ;;  %v1780_v52 = vmul.f32 %v1771_v60, %v3616_v25 }
 0x635   : > { %1789 = vst [vmem:[%s3813_s5] sm:$0xff] %v1781_v31  ;;  %1795 = vst [vmem:[%s3813_s5 + $0x30] sm:$0xff] %v1787_v2  ;;  %v1782_v51 = vadd.f32 %v1774_v59, %v1760_v37  ;;  %v1788_v42 = vadd.f32 %v1780_v52, %v1772_v57 }
 0x636   : > { %v1728_v11 = vpop.f32.mrb[36].mxu0 }
 0x637   : > { %1790 = vst [vmem:[%s3813_s5 + $0x8] sm:$0xff] %v1782_v51  ;;  %1796 = vst [vmem:[%s3813_s5 + $0x38] sm:$0xff] %v1788_v42  ;;  %v1761_v41 = vmul.f32 0.00027777778, %v1728_v11  ;;  %v1730_v62 = vpop.f32.mrb[37].mxu0 }
 0x638   : > { %v1762_v27 = vmul.f32 0.00027777778, %v1730_v62  ;;  %v1732_v25 = vpop.f32.mrb[38].mxu0 }
 0x639   : > { %v1775_v61 = vmul.f32 %v1761_v41, %v3595_v48  ;;  %v1763_v6 = vmul.f32 0.00027777778, %v1732_v25  ;;  %v1734_v18 = vpop.f32.mrb[39].mxu0 }
 0x63a   : > { %v1764_v53 = vmul.f32 0.00027777778, %v1734_v18 }
 0x63b   : > { %v1783_v35 = vadd.f32 %v1775_v61, %v1762_v27  ;;  %v1776_v22 = vmul.f32 %v1763_v6, %v3576_v0 }
 0x63d   : > { %1791 = vst [vmem:[%s3813_s5 + $0x10] sm:$0xff] %v1783_v35  ;;  %v1784_v28 = vadd.f32 %v1776_v22, %v1764_v53 }
 0x63e   : > { %v1738_v33 = vpop.f32.mrb[40].mxu0 }
 0x63f   : > { %1792 = vst [vmem:[%s3813_s5 + $0x18] sm:$0xff] %v1784_v28  ;;  %v1765_v10 = vmul.f32 0.00027777778, %v1738_v33  ;;  %v1740_v49 = vpop.f32.mrb[41].mxu0 }
 0x640   : > { %v1766_v3 = vmul.f32 0.00027777778, %v1740_v49  ;;  %v1742_v34 = vpop.f32.mrb[42].mxu0 }
 0x641   : > { %v1777_v48 = vmul.f32 %v1765_v10, %v3608_v55  ;;  %v1767_v50 = vmul.f32 0.00027777778, %v1742_v34  ;;  %v1744_v36 = vpop.f32.mrb[43].mxu0 }
 0x642   : > { %v1768_v40 = vmul.f32 0.00027777778, %v1744_v36 }
 0x643   : > { %v1785_v0 = vadd.f32 %v1777_v48, %v1766_v3  ;;  %v1778_v38 = vmul.f32 %v1767_v50, %v3610_v5 }
 0x645   : > { %1793 = vst [vmem:[%s3813_s5 + $0x20] sm:$0xff] %v1785_v0  ;;  %v1786_v45 = vadd.f32 %v1778_v38, %v1768_v40 }
 0x647   : > { %1794 = vst [vmem:[%s3813_s5 + $0x28] sm:$0xff] %v1786_v45 }
 0x648   : > { %2359 = shalt.err (!%p2356_p2)
}
 0x649   : > { %s2360_s18 = scalar_lea.hbm %s3832_s17, 1024  ;;  %s2364_s21 = scalar_lea.hbm %s3881_s3, 2048 }
 0x64a   : > { %p2361_p13 = scmp.ne.s32.totalorder %s3832_s17, %s2360_s18  ;;  %p2365_p4 = scmp.lt.u32.totalorder %s3832_s17, %s3881_s3 }
 0x64b   : > { %p2366_p5 = scmp.lt.u32.totalorder %s2364_s21, %s2360_s18  ;;  %p2368_p11 = scmp.lt.u32.totalorder %s2360_s18, %s3832_s17 }
 0x64c   : > { %p2362_p6 = pnand %p2361_p13, %p4039_p0 }
 0x64d   : > { %p2367_p8 = por %p2366_p5, %p2365_p4 }
 0x64e   : > { %p2363_p10 = pneg %p2362_p6 }
 0x64f   : > { %p2369_p1 = por %p2368_p11, %p2367_p8 }
 0x651   : > { %p2370_p3 = pnand %p2369_p1, %p2363_p10 }
 0x653   : > { %2373 = shalt.err (!%p2370_p3)
}
 0x654   : > { %s2433_s23 = smov 128   ;;  %s2434_s5 = smov 8  }
 0x655   : > { %2154 = dma.vmem_to_hbm [thread:$0]  (%p4039_p0), %s3826_s10, 1024, %s3832_s17, %s1798_s24, %s2433_s23, %s2433_s23, %s2434_s5  }
 0x656 PF: > { %s1826_s11 = sand.u32 1, %s2404_s12   ;;  %p4040_p7 = scmp.ne.s32.totalorder %s3937_s19, 0 }
 0x657   : > { %p4041_p9 = scmp.ge.s32.totalorder %s2416_s15, 2  ;;  %s1827_s25 = scalar_lea.sflag [#allocation4], %s1826_s11 }
 0x659   : > { %p2168_p12 = pnand %p4041_p9, %p4040_p7 }
 0x65b   : > { %2399 = dma.done.wait (!%p2168_p12), %s1827_s25, 1024  }
 0x65c   : > { %2401 = vsyncadd (!%p2168_p12), %s1827_s25, 4294966272  ;;  %p17_p2 = scmp.ge.s32.totalorder %s2565_s4, 4   ;;  %s4042_s12 = smov %s2408_s13 }
 0x65d   : > { %s4043_s13 = smov %s2412_s14  ;;  %s4044_s14 = smov %s2581_s9 }
 0x65e   : > { %s4045_s15 = smov %s2565_s4  ;;  %19 = sbr.rel (!%p17_p2) target bundleno = 6 (0x6), region = 87 }
 0x665   :  { %1832 = vsyncpa [#allocation3], 1 }
 0x666   :  { %1834 = vsyncpa [#allocation3 + $0x1], 1 }
 0x667   :  { %1835 = vsyncpa [#allocation6], 1 }
 0x668   :  { %1836 = vsyncpa [#allocation4], 1 }
 0x669   :  { %1838 = vsyncpa [#allocation4 + $0x1], 1 }

</bundles_post_ra>
